<compile_context>
chip_gen: v5e
topology: v5e:2x2
jax: 0.10.0
libtpu: 0.0.40
codegen_flags: <defaults>
</compile_context>

<pallas_src>
import functools

import jax
import jax.numpy as jnp
from jax import lax
from jax.experimental import pallas as pl
from jax.experimental.pallas import tpu as pltpu

EPS = 1e-5
LANE = 128

# Flip to jnp.bfloat16 on v6e/v7x for ~2x MXU throughput and half the weight DMA /
# VMEM residency (loosen the accuracy tolerance accordingly).
MATMUL_DTYPE = jnp.float32
# Storage dtype of the inter-layer activation streams h1/h2/h3 in the tiled path
# (they are HBM-bandwidth bound); bf16 halves that traffic at a small accuracy cost.
ACT_DTYPE = jnp.float32

# Conservative VMEM budgets so the same code runs on v5e/v6e (128 MiB) and v7x (64 MiB).
FUSED_VMEM_BUDGET = 24 << 20   # whole-batch-resident single-kernel path
TILED_VMEM_BUDGET = 40 << 20   # per-call double-buffered working set
VMEM_LIMIT_BYTES = 48 << 20    # scoped-VMEM limit handed to Mosaic


def _round_up(n, m):
    return (n + m - 1) // m * m


def _pad_cols(a, cols):
    return jnp.pad(a, ((0, 0), (0, cols - a.shape[1])))


def _pad_rows_cols(a, rows, cols):
    return jnp.pad(a, ((0, rows - a.shape[0]), (0, cols - a.shape[1])))


def _sigmoid(x):
    # EUP tanh + 2 cheap VPU ops; avoids the f32 divide of 1/(1+exp(-x)).
    return 0.5 * jnp.tanh(0.5 * x) + 0.5


def _fold_bn(stats, gb, batch):
    # stats[0] = sum(h), stats[1] = sum(h*h) over the true batch rows.
    # Fold train-mode BatchNorm1d into per-feature scale/shift:
    #   scale = gamma * rsqrt(var + eps); shift = beta - mu * scale
    inv_n = 1.0 / batch
    mu = stats[0:1, :] * inv_n
    var = stats[1:2, :] * inv_n - mu * mu          # biased variance (train-mode BN)
    scale = gb[0:1, :] * lax.rsqrt(var + EPS)
    shift = gb[1:2, :] - mu * scale
    return scale, shift


def _sum_sumsq(h):
    return jnp.concatenate(
        [jnp.sum(h, axis=0, keepdims=True),
         jnp.sum(h * h, axis=0, keepdims=True)], axis=0)


def _mask_rows(h, tile_idx, tile, batch):
    # (TB, 1) column mask; lane broadcast handled by jnp.where.
    rows = tile_idx * tile + lax.broadcasted_iota(jnp.int32, (tile, 1), 0)
    return jnp.where(rows < batch, h, 0.0)


def _write_partial_stats(stats_ref, h, tile_idx, tile, batch, needs_mask):
    """Write this tile's (sum, sumsq); padded rows masked only on the tail tile."""
    if needs_mask:
        last = pl.num_programs(0) - 1

        @pl.when(tile_idx != last)
        def _():
            stats_ref[0] = _sum_sumsq(h)

        @pl.when(tile_idx == last)
        def _():
            stats_ref[0] = _sum_sumsq(_mask_rows(h, tile_idx, tile, batch))
    else:
        stats_ref[0] = _sum_sumsq(h)


# ----------------------------- tiled-path kernels -----------------------------------

def _fc_stats_kernel(x_ref, w_ref, b_ref, h_ref, stats_ref, *, batch, tile, needs_mask):
    """Layer 1: h = x @ W1 + b1, plus this tile's per-feature (sum, sumsq)."""
    i = pl.program_id(0)
    h = jnp.dot(x_ref[...].astype(MATMUL_DTYPE), w_ref[...],
                preferred_element_type=jnp.float32) + b_ref[...]
    h_ref[...] = h.astype(h_ref.dtype)
    _write_partial_stats(stats_ref, h, i, tile, batch, needs_mask)


def _bn_fc_stats_kernel(h_ref, stats_in_ref, gb_ref, w_ref, b_ref,
                        o_ref, stats_out_ref, *, batch, tile, needs_mask):
    """BN(prev layer, folded) + sigmoid + next matmul, plus next layer's partial stats."""
    i = pl.program_id(0)
    scale, shift = _fold_bn(stats_in_ref[...], gb_ref[...], batch)
    a = _sigmoid(h_ref[...].astype(jnp.float32) * scale + shift)
    h_next = jnp.dot(a.astype(MATMUL_DTYPE), w_ref[...],
                     preferred_element_type=jnp.float32) + b_ref[...]
    o_ref[...] = h_next.astype(o_ref.dtype)
    _write_partial_stats(stats_out_ref, h_next, i, tile, batch, needs_mask)


def _bn_fc_out_kernel(h_ref, stats_in_ref, gb_ref, w_ref, b_ref, o_ref, *, batch):
    """BN(bn3, folded) + sigmoid + fc4 (lane-dense padded) + sigmoid."""
    scale, shift = _fold_bn(stats_in_ref[...], gb_ref[...], batch)
    a = _sigmoid(h_ref[...].astype(jnp.float32) * scale + shift)
    logits = jnp.dot(a.astype(MATMUL_DTYPE), w_ref[...],
                     preferred_element_type=jnp.float32) + b_ref[...]
    o_ref[...] = _sigmoid(logits)


# ----------------------------- fully fused kernel -----------------------------------

def _fused_mlp_kernel(x_ref, w1_ref, b1_ref, gb1_ref, w2_ref, b2_ref, gb2_ref,
                      w3_ref, b3_ref, gb3_ref, w4_ref, b4_ref, o_ref, *, batch):
    """Whole forward pass with the full (padded) batch resident in VMEM.

    Uses centered two-pass variance (full batch is on-chip), which is better
    conditioned than the streaming sum/sumsq accumulation of the tiled path.
    """
    rows = x_ref.shape[0]
    needs_mask = rows != batch
    mask = None
    if needs_mask:
        mask = lax.broadcasted_iota(jnp.int32, (rows, 1), 0) < batch
    inv_n = 1.0 / batch

    def bn_sigmoid(h, gb_ref):
        hm = jnp.where(mask, h, 0.0) if needs_mask else h
        mu = jnp.sum(hm, axis=0, keepdims=True) * inv_n
        d = h - mu
        if needs_mask:
            d = jnp.where(mask, d, 0.0)
        var = jnp.sum(d * d, axis=0, keepdims=True) * inv_n
        scale = gb_ref[0:1, :] * lax.rsqrt(var + EPS)
        shift = gb_ref[1:2, :] - mu * scale
        return _sigmoid(h * scale + shift)

    mm = MATMUL_DTYPE
    h1 = jnp.dot(x_ref[...].astype(mm), w1_ref[...],
                 preferred_element_type=jnp.float32) + b1_ref[...]
    a1 = bn_sigmoid(h1, gb1_ref)
    h2 = jnp.dot(a1.astype(mm), w2_ref[...],
                 preferred_element_type=jnp.float32) + b2_ref[...]
    a2 = bn_sigmoid(h2, gb2_ref)
    h3 = jnp.dot(a2.astype(mm), w3_ref[...],
                 preferred_element_type=jnp.float32) + b3_ref[...]
    a3 = bn_sigmoid(h3, gb3_ref)
    logits = jnp.dot(a3.astype(mm), w4_ref[...],
                     preferred_element_type=jnp.float32) + b4_ref[...]
    o_ref[...] = _sigmoid(logits)


# --------------------------------- wrapper -------------------------------------------

def tabular_mlp_forward(x, params, *, tile_b=512, force_tiled=False):
    """Forward pass of TabularMLP.  x: [B, input_dim] float32; params from init_params."""
    B, in_dim = x.shape
    f1 = params["w1"].shape[1]          # hidden_dim
    f2 = params["w2"].shape[1]          # 2 * hidden_dim
    f3 = params["w3"].shape[1]          # hidden_dim
    out_dim = params["w4"].shape[1]

    # Lane-dense padding of every hidden / output feature axis (multiples of 128).
    f1p, f2p, f3p = (_round_up(f, LANE) for f in (f1, f2, f3))
    out_p = _round_up(out_dim, LANE)

    mm = MATMUL_DTYPE
    w1 = _pad_cols(params["w1"], f1p).astype(mm)
    b1 = _pad_cols(params["b1"], f1p)
    gb1 = _pad_cols(jnp.concatenate([params["g1"], params["be1"]], axis=0), f1p)

    w2 = _pad_rows_cols(params["w2"], f1p, f2p).astype(mm)
    b2 = _pad_cols(params["b2"], f2p)
    gb2 = _pad_cols(jnp.concatenate([params["g2"], params["be2"]], axis=0), f2p)

    w3 = _pad_rows_cols(params["w3"], f2p, f3p).astype(mm)
    b3 = _pad_cols(params["b3"], f3p)
    gb3 = _pad_cols(jnp.concatenate([params["g3"], params["be3"]], axis=0), f3p)

    w4 = _pad_rows_cols(params["w4"], f3p, out_p).astype(mm)
    b4 = _pad_cols(params["b4"], out_p)

    itemsize = 4
    w_elems = in_dim * f1p + f1p * f2p + f2p * f3p + f3p * out_p

    # ---- Fully fused path: whole (padded) batch stays resident in VMEM ------------
    B8 = _round_up(B, 8)
    act_elems = B8 * (in_dim + 2 * (f1p + f2p + f3p) + out_p)
    if not force_tiled and itemsize * (act_elems + w_elems) <= FUSED_VMEM_BUDGET:
        xp = jnp.pad(x, ((0, B8 - B), (0, 0)))
        y = pl.pallas_call(
            functools.partial(_fused_mlp_kernel, batch=B),
            out_shape=jax.ShapeDtypeStruct((B8, out_p), jnp.float32),
            compiler_params=pltpu.CompilerParams(vmem_limit_bytes=VMEM_LIMIT_BYTES),
        )(xp, w1, b1, gb1, w2, b2, gb2, w3, b3, gb3, w4, b4)
        return y[:B, :out_dim]

    # ---- Tiled pipeline: 4 batch-tiled pallas_calls --------------------------------
    # Largest batch tile whose double-buffered working set fits the budget.
    TB = max(8, _round_up(min(tile_b, B), 8))
    max_io = max(in_dim + f1p, f1p + f2p, f2p + f3p, f3p + out_p)
    max_w = max(in_dim * f1p, f1p * f2p, f2p * f3p, f3p * out_p)

    def _working_set(tb):
        return itemsize * (2 * tb * max_io + max_w + 16 * max(f1p, f2p, f3p, out_p))

    while TB > 8 and _working_set(TB) > TILED_VMEM_BUDGET:
        TB = max(8, _round_up(TB // 2, 8))

    B_pad = _round_up(B, TB)
    n_tiles = B_pad // TB
    needs_mask = B_pad != B
    if needs_mask:
        x = jnp.pad(x, ((0, B_pad - B), (0, 0)))

    row = lambda i: (i, 0)          # batch-tiled blocks
    const = lambda i: (0, 0)        # VMEM-resident full blocks (weights, gb, stats)
    per_tile = lambda i: (i, 0, 0)  # per-tile partial-stats blocks

    # Per-tile partial stats -> no cross-tile carried state -> grid axis "parallel"
    # (megacore on v7x; neutral on v5e/v6e).
    cparams = pltpu.CompilerParams(dimension_semantics=("parallel",),
                                   vmem_limit_bytes=VMEM_LIMIT_BYTES)

    # ---- Layer 1: fc1 + per-tile batch stats ---------------------------------------
    h1, s1p = pl.pallas_call(
        functools.partial(_fc_stats_kernel, batch=B, tile=TB, needs_mask=needs_mask),
        grid=(n_tiles,),
        in_specs=[pl.BlockSpec((TB, in_dim), row),
                  pl.BlockSpec((in_dim, f1p), const),
                  pl.BlockSpec((1, f1p), const)],
        out_specs=[pl.BlockSpec((TB, f1p), row),
                   pl.BlockSpec((1, 2, f1p), per_tile)],
        out_shape=[jax.ShapeDtypeStruct((B_pad, f1p), ACT_DTYPE),
                   jax.ShapeDtypeStruct((n_tiles, 2, f1p), jnp.float32)],
        compiler_params=cparams,
    )(x, w1, b1)
    s1 = jnp.sum(s1p, axis=0)

    # ---- Layer 2: bn1-fold + sigmoid + fc2 + per-tile stats -------------------------
    h2, s2p = pl.pallas_call(
        functools.partial(_bn_fc_stats_kernel, batch=B, tile=TB, needs_mask=needs_mask),
        grid=(n_tiles,),
        in_specs=[pl.BlockSpec((TB, f1p), row),
                  pl.BlockSpec((2, f1p), const),
                  pl.BlockSpec((2, f1p), const),
                  pl.BlockSpec((f1p, f2p), const),
                  pl.BlockSpec((1, f2p), const)],
        out_specs=[pl.BlockSpec((TB, f2p), row),
                   pl.BlockSpec((1, 2, f2p), per_tile)],
        out_shape=[jax.ShapeDtypeStruct((B_pad, f2p), ACT_DTYPE),
                   jax.ShapeDtypeStruct((n_tiles, 2, f2p), jnp.float32)],
        compiler_params=cparams,
    )(h1, s1, gb1, w2, b2)
    s2 = jnp.sum(s2p, axis=0)

    # ---- Layer 3: bn2-fold + sigmoid + fc3 + per-tile stats -------------------------
    h3, s3p = pl.pallas_call(
        functools.partial(_bn_fc_stats_kernel, batch=B, tile=TB, needs_mask=needs_mask),
        grid=(n_tiles,),
        in_specs=[pl.BlockSpec((TB, f2p), row),
                  pl.BlockSpec((2, f2p), const),
                  pl.BlockSpec((2, f2p), const),
                  pl.BlockSpec((f2p, f3p), const),
                  pl.BlockSpec((1, f3p), const)],
        out_specs=[pl.BlockSpec((TB, f3p), row),
                   pl.BlockSpec((1, 2, f3p), per_tile)],
        out_shape=[jax.ShapeDtypeStruct((B_pad, f3p), ACT_DTYPE),
                   jax.ShapeDtypeStruct((n_tiles, 2, f3p), jnp.float32)],
        compiler_params=cparams,
    )(h2, s2, gb2, w3, b3)
    s3 = jnp.sum(s3p, axis=0)

    # ---- Layer 4: bn3-fold + sigmoid + fc4 + sigmoid (lane-dense output) ------------
    y = pl.pallas_call(
        functools.partial(_bn_fc_out_kernel, batch=B),
        grid=(n_tiles,),
        in_specs=[pl.BlockSpec((TB, f3p), row),
                  pl.BlockSpec((2, f3p), const),
                  pl.BlockSpec((2, f3p), const),
                  pl.BlockSpec((f3p, out_p), const),
                  pl.BlockSpec((1, out_p), const)],
        out_specs=pl.BlockSpec((TB, out_p), row),
        out_shape=jax.ShapeDtypeStruct((B_pad, out_p), jnp.float32),
        compiler_params=cparams,
    )(h3, s3, gb3, w4, b4)

    return y[:B, :out_dim]


# --------------------------- params / reference / test -------------------------------

def init_params(key, input_dim, hidden_dim, output_dim):
    """Deterministic synthetic parameters. Linear weights are stored as [in, out]."""
    ks = jax.random.split(key, 14)

    def lin(kw, kb, fan_in, fan_out):
        bound = 1.0 / jnp.sqrt(fan_in)
        w = jax.random.uniform(kw, (fan_in, fan_out), jnp.float32, -bound, bound)
        b = jax.random.uniform(kb, (1, fan_out), jnp.float32, -bound, bound)
        return w, b

    w1, b1 = lin(ks[0], ks[1], input_dim, hidden_dim)
    w2, b2 = lin(ks[2], ks[3], hidden_dim, 2 * hidden_dim)
    w3, b3 = lin(ks[4], ks[5], 2 * hidden_dim, hidden_dim)
    w4, b4 = lin(ks[6], ks[7], hidden_dim, output_dim)

    g1 = 1.0 + 0.1 * jax.random.normal(ks[8], (1, hidden_dim), jnp.float32)
    be1 = 0.1 * jax.random.normal(ks[9], (1, hidden_dim), jnp.float32)
    g2 = 1.0 + 0.1 * jax.random.normal(ks[10], (1, 2 * hidden_dim), jnp.float32)
    be2 = 0.1 * jax.random.normal(ks[11], (1, 2 * hidden_dim), jnp.float32)
    g3 = 1.0 + 0.1 * jax.random.normal(ks[12], (1, hidden_dim), jnp.float32)
    be3 = 0.1 * jax.random.normal(ks[13], (1, hidden_dim), jnp.float32)

    return dict(
        w1=w1, b1=b1, g1=g1, be1=be1,
        w2=w2, b2=b2, g2=g2, be2=be2,
        w3=w3, b3=b3, g3=g3, be3=be3,
        w4=w4, b4=b4,
    )


def reference_forward(x, p):
    """Pure-JAX reference matching PyTorch semantics (train-mode BatchNorm1d)."""
    def dot(a, w):
        return jnp.dot(a, w, precision=jax.lax.Precision.HIGHEST)

    def bn(h, g, b):
        mu = jnp.mean(h, axis=0, keepdims=True)
        var = jnp.mean((h - mu) ** 2, axis=0, keepdims=True)
        return (h - mu) / jnp.sqrt(var + EPS) * g + b

    h = jax.nn.sigmoid(bn(dot(x, p["w1"]) + p["b1"], p["g1"], p["be1"]))
    h = jax.nn.sigmoid(bn(dot(h, p["w2"]) + p["b2"], p["g2"], p["be2"]))
    h = jax.nn.sigmoid(bn(dot(h, p["w3"]) + p["b3"], p["g3"], p["be3"]))
    return jax.nn.sigmoid(dot(h, p["w4"]) + p["b4"])


if __name__ == "__main__":
    # Small shapes consistent with the module; B chosen so the tiled path exercises
    # multiple batch tiles, per-tile partial-stats reduction and tail-row masking.
    B, input_dim, hidden_dim, output_dim = 200, 16, 32, 4

    key = jax.random.PRNGKey(0)
    kx, kp = jax.random.split(key)
    x = jax.random.normal(kx, (B, input_dim), jnp.float32)
    params = init_params(kp, input_dim, hidden_dim, output_dim)

    ref = jax.block_until_ready(reference_forward(x, params))

    # 1) Fully fused single-kernel path (whole batch resident in VMEM).
    fwd_fused = jax.jit(tabular_mlp_forward)
    out_fused = jax.block_until_ready(fwd_fused(x, params))
    assert out_fused.shape == (B, output_dim)
    err_f = jnp.max(jnp.abs(out_fused - ref))
    assert jnp.allclose(out_fused, ref, atol=1e-4, rtol=1e-4), f"fused mismatch: {err_f}"

    # 2) Tiled multi-call path (forced, small tile to exercise the batch grid).
    fwd_tiled = jax.jit(functools.partial(tabular_mlp_forward,
                                          force_tiled=True, tile_b=64))
    out_tiled = jax.block_until_ready(fwd_tiled(x, params))
    assert out_tiled.shape == (B, output_dim)
    err_t = jnp.max(jnp.abs(out_tiled - ref))
    assert jnp.allclose(out_tiled, ref, atol=1e-4, rtol=1e-4), f"tiled mismatch: {err_t}"

    print("KERNEL_OK")
</pallas_src>

<mosaic_0001>
module attributes {stable_mosaic.version = 11 : i64} {
  func.func @_fused_mlp_kernel(%arg0: memref<200x16xf32, #tpu.memory_space<vmem>>, %arg1: memref<16x128xf32, #tpu.memory_space<vmem>>, %arg2: memref<1x128xf32, #tpu.memory_space<vmem>>, %arg3: memref<2x128xf32, #tpu.memory_space<vmem>>, %arg4: memref<128x128xf32, #tpu.memory_space<vmem>>, %arg5: memref<1x128xf32, #tpu.memory_space<vmem>>, %arg6: memref<2x128xf32, #tpu.memory_space<vmem>>, %arg7: memref<128x128xf32, #tpu.memory_space<vmem>>, %arg8: memref<1x128xf32, #tpu.memory_space<vmem>>, %arg9: memref<2x128xf32, #tpu.memory_space<vmem>>, %arg10: memref<128x128xf32, #tpu.memory_space<vmem>>, %arg11: memref<1x128xf32, #tpu.memory_space<vmem>>, %arg12: memref<200x128xf32, #tpu.memory_space<vmem>>) attributes {dimension_semantics = [], scalar_prefetch = 0 : i64, scratch_operands = 0 : i64, tpu.core_type = #tpu.core_type<tc>} {
    %c0 = arith.constant 0 : index
    %c0_0 = arith.constant 0 : index
    %0 = vector.load %arg0[%c0, %c0_0] : memref<200x16xf32, #tpu.memory_space<vmem>>, vector<200x16xf32>
    %c0_1 = arith.constant 0 : index
    %c0_2 = arith.constant 0 : index
    %1 = vector.load %arg1[%c0_1, %c0_2] : memref<16x128xf32, #tpu.memory_space<vmem>>, vector<16x128xf32>
    %cst = arith.constant dense<0.000000e+00> : vector<200x128xf32>
    %2 = tpu.matmul %0, %1, %cst {dimension_numbers = #tpu.dot_dimension_numbers<[1], [0], [0], [1], [0, 0, 1, 1], [], []>} : vector<200x16xf32>, vector<16x128xf32>, vector<200x128xf32> -> vector<200x128xf32>
    %c0_3 = arith.constant 0 : index
    %c0_4 = arith.constant 0 : index
    %3 = vector.load %arg2[%c0_3, %c0_4] : memref<1x128xf32, #tpu.memory_space<vmem>>, vector<1x128xf32>
    %4 = vector.broadcast %3 : vector<1x128xf32> to vector<200x128xf32>
    %5 = arith.addf %2, %4 : vector<200x128xf32>
    %cst_5 = arith.constant dense<0.000000e+00> : vector<128xf32>
    %6 = vector.multi_reduction <add>, %5, %cst_5 [0] : vector<200x128xf32> to vector<128xf32>
    %7 = vector.shape_cast %6 : vector<128xf32> to vector<1x128xf32>
    %cst_6 = arith.constant 5.000000e-03 : f32
    %8 = vector.broadcast %cst_6 : f32 to vector<1x128xf32>
    %9 = arith.mulf %7, %8 : vector<1x128xf32>
    %10 = vector.broadcast %9 : vector<1x128xf32> to vector<200x128xf32>
    %11 = arith.subf %5, %10 : vector<200x128xf32>
    %12 = arith.mulf %11, %11 : vector<200x128xf32>
    %cst_7 = arith.constant dense<0.000000e+00> : vector<128xf32>
    %13 = vector.multi_reduction <add>, %12, %cst_7 [0] : vector<200x128xf32> to vector<128xf32>
    %14 = vector.shape_cast %13 : vector<128xf32> to vector<1x128xf32>
    %cst_8 = arith.constant 5.000000e-03 : f32
    %15 = vector.broadcast %cst_8 : f32 to vector<1x128xf32>
    %16 = arith.mulf %14, %15 : vector<1x128xf32>
    %c0_9 = arith.constant 0 : index
    %c0_10 = arith.constant 0 : index
    %17 = vector.load %arg3[%c0_9, %c0_10] : memref<2x128xf32, #tpu.memory_space<vmem>>, vector<1x128xf32>
    %cst_11 = arith.constant 9.99999974E-6 : f32
    %18 = vector.broadcast %cst_11 : f32 to vector<1x128xf32>
    %19 = arith.addf %16, %18 : vector<1x128xf32>
    %20 = math.rsqrt %19 : vector<1x128xf32>
    %21 = arith.mulf %17, %20 : vector<1x128xf32>
    %c1 = arith.constant 1 : index
    %c0_12 = arith.constant 0 : index
    %22 = vector.load %arg3[%c1, %c0_12] : memref<2x128xf32, #tpu.memory_space<vmem>>, vector<1x128xf32>
    %23 = arith.mulf %9, %21 : vector<1x128xf32>
    %24 = arith.subf %22, %23 : vector<1x128xf32>
    %25 = vector.broadcast %21 : vector<1x128xf32> to vector<200x128xf32>
    %26 = arith.mulf %5, %25 : vector<200x128xf32>
    %27 = vector.broadcast %24 : vector<1x128xf32> to vector<200x128xf32>
    %28 = arith.addf %26, %27 : vector<200x128xf32>
    %cst_13 = arith.constant 5.000000e-01 : f32
    %29 = vector.broadcast %cst_13 : f32 to vector<200x128xf32>
    %30 = arith.mulf %29, %28 : vector<200x128xf32>
    %31 = math.tanh %30 : vector<200x128xf32>
    %cst_14 = arith.constant 5.000000e-01 : f32
    %32 = vector.broadcast %cst_14 : f32 to vector<200x128xf32>
    %33 = arith.mulf %32, %31 : vector<200x128xf32>
    %cst_15 = arith.constant 5.000000e-01 : f32
    %34 = vector.broadcast %cst_15 : f32 to vector<200x128xf32>
    %35 = arith.addf %33, %34 : vector<200x128xf32>
    %c0_16 = arith.constant 0 : index
    %c0_17 = arith.constant 0 : index
    %36 = vector.load %arg4[%c0_16, %c0_17] : memref<128x128xf32, #tpu.memory_space<vmem>>, vector<128x128xf32>
    %cst_18 = arith.constant dense<0.000000e+00> : vector<200x128xf32>
    %37 = tpu.matmul %35, %36, %cst_18 {dimension_numbers = #tpu.dot_dimension_numbers<[1], [0], [0], [1], [0, 0, 1, 1], [], []>} : vector<200x128xf32>, vector<128x128xf32>, vector<200x128xf32> -> vector<200x128xf32>
    %c0_19 = arith.constant 0 : index
    %c0_20 = arith.constant 0 : index
    %38 = vector.load %arg5[%c0_19, %c0_20] : memref<1x128xf32, #tpu.memory_space<vmem>>, vector<1x128xf32>
    %39 = vector.broadcast %38 : vector<1x128xf32> to vector<200x128xf32>
    %40 = arith.addf %37, %39 : vector<200x128xf32>
    %cst_21 = arith.constant dense<0.000000e+00> : vector<128xf32>
    %41 = vector.multi_reduction <add>, %40, %cst_21 [0] : vector<200x128xf32> to vector<128xf32>
    %42 = vector.shape_cast %41 : vector<128xf32> to vector<1x128xf32>
    %cst_22 = arith.constant 5.000000e-03 : f32
    %43 = vector.broadcast %cst_22 : f32 to vector<1x128xf32>
    %44 = arith.mulf %42, %43 : vector<1x128xf32>
    %45 = vector.broadcast %44 : vector<1x128xf32> to vector<200x128xf32>
    %46 = arith.subf %40, %45 : vector<200x128xf32>
    %47 = arith.mulf %46, %46 : vector<200x128xf32>
    %cst_23 = arith.constant dense<0.000000e+00> : vector<128xf32>
    %48 = vector.multi_reduction <add>, %47, %cst_23 [0] : vector<200x128xf32> to vector<128xf32>
    %49 = vector.shape_cast %48 : vector<128xf32> to vector<1x128xf32>
    %cst_24 = arith.constant 5.000000e-03 : f32
    %50 = vector.broadcast %cst_24 : f32 to vector<1x128xf32>
    %51 = arith.mulf %49, %50 : vector<1x128xf32>
    %c0_25 = arith.constant 0 : index
    %c0_26 = arith.constant 0 : index
    %52 = vector.load %arg6[%c0_25, %c0_26] : memref<2x128xf32, #tpu.memory_space<vmem>>, vector<1x128xf32>
    %cst_27 = arith.constant 9.99999974E-6 : f32
    %53 = vector.broadcast %cst_27 : f32 to vector<1x128xf32>
    %54 = arith.addf %51, %53 : vector<1x128xf32>
    %55 = math.rsqrt %54 : vector<1x128xf32>
    %56 = arith.mulf %52, %55 : vector<1x128xf32>
    %c1_28 = arith.constant 1 : index
    %c0_29 = arith.constant 0 : index
    %57 = vector.load %arg6[%c1_28, %c0_29] : memref<2x128xf32, #tpu.memory_space<vmem>>, vector<1x128xf32>
    %58 = arith.mulf %44, %56 : vector<1x128xf32>
    %59 = arith.subf %57, %58 : vector<1x128xf32>
    %60 = vector.broadcast %56 : vector<1x128xf32> to vector<200x128xf32>
    %61 = arith.mulf %40, %60 : vector<200x128xf32>
    %62 = vector.broadcast %59 : vector<1x128xf32> to vector<200x128xf32>
    %63 = arith.addf %61, %62 : vector<200x128xf32>
    %cst_30 = arith.constant 5.000000e-01 : f32
    %64 = vector.broadcast %cst_30 : f32 to vector<200x128xf32>
    %65 = arith.mulf %64, %63 : vector<200x128xf32>
    %66 = math.tanh %65 : vector<200x128xf32>
    %cst_31 = arith.constant 5.000000e-01 : f32
    %67 = vector.broadcast %cst_31 : f32 to vector<200x128xf32>
    %68 = arith.mulf %67, %66 : vector<200x128xf32>
    %cst_32 = arith.constant 5.000000e-01 : f32
    %69 = vector.broadcast %cst_32 : f32 to vector<200x128xf32>
    %70 = arith.addf %68, %69 : vector<200x128xf32>
    %c0_33 = arith.constant 0 : index
    %c0_34 = arith.constant 0 : index
    %71 = vector.load %arg7[%c0_33, %c0_34] : memref<128x128xf32, #tpu.memory_space<vmem>>, vector<128x128xf32>
    %cst_35 = arith.constant dense<0.000000e+00> : vector<200x128xf32>
    %72 = tpu.matmul %70, %71, %cst_35 {dimension_numbers = #tpu.dot_dimension_numbers<[1], [0], [0], [1], [0, 0, 1, 1], [], []>} : vector<200x128xf32>, vector<128x128xf32>, vector<200x128xf32> -> vector<200x128xf32>
    %c0_36 = arith.constant 0 : index
    %c0_37 = arith.constant 0 : index
    %73 = vector.load %arg8[%c0_36, %c0_37] : memref<1x128xf32, #tpu.memory_space<vmem>>, vector<1x128xf32>
    %74 = vector.broadcast %73 : vector<1x128xf32> to vector<200x128xf32>
    %75 = arith.addf %72, %74 : vector<200x128xf32>
    %cst_38 = arith.constant dense<0.000000e+00> : vector<128xf32>
    %76 = vector.multi_reduction <add>, %75, %cst_38 [0] : vector<200x128xf32> to vector<128xf32>
    %77 = vector.shape_cast %76 : vector<128xf32> to vector<1x128xf32>
    %cst_39 = arith.constant 5.000000e-03 : f32
    %78 = vector.broadcast %cst_39 : f32 to vector<1x128xf32>
    %79 = arith.mulf %77, %78 : vector<1x128xf32>
    %80 = vector.broadcast %79 : vector<1x128xf32> to vector<200x128xf32>
    %81 = arith.subf %75, %80 : vector<200x128xf32>
    %82 = arith.mulf %81, %81 : vector<200x128xf32>
    %cst_40 = arith.constant dense<0.000000e+00> : vector<128xf32>
    %83 = vector.multi_reduction <add>, %82, %cst_40 [0] : vector<200x128xf32> to vector<128xf32>
    %84 = vector.shape_cast %83 : vector<128xf32> to vector<1x128xf32>
    %cst_41 = arith.constant 5.000000e-03 : f32
    %85 = vector.broadcast %cst_41 : f32 to vector<1x128xf32>
    %86 = arith.mulf %84, %85 : vector<1x128xf32>
    %c0_42 = arith.constant 0 : index
    %c0_43 = arith.constant 0 : index
    %87 = vector.load %arg9[%c0_42, %c0_43] : memref<2x128xf32, #tpu.memory_space<vmem>>, vector<1x128xf32>
    %cst_44 = arith.constant 9.99999974E-6 : f32
    %88 = vector.broadcast %cst_44 : f32 to vector<1x128xf32>
    %89 = arith.addf %86, %88 : vector<1x128xf32>
    %90 = math.rsqrt %89 : vector<1x128xf32>
    %91 = arith.mulf %87, %90 : vector<1x128xf32>
    %c1_45 = arith.constant 1 : index
    %c0_46 = arith.constant 0 : index
    %92 = vector.load %arg9[%c1_45, %c0_46] : memref<2x128xf32, #tpu.memory_space<vmem>>, vector<1x128xf32>
    %93 = arith.mulf %79, %91 : vector<1x128xf32>
    %94 = arith.subf %92, %93 : vector<1x128xf32>
    %95 = vector.broadcast %91 : vector<1x128xf32> to vector<200x128xf32>
    %96 = arith.mulf %75, %95 : vector<200x128xf32>
    %97 = vector.broadcast %94 : vector<1x128xf32> to vector<200x128xf32>
    %98 = arith.addf %96, %97 : vector<200x128xf32>
    %cst_47 = arith.constant 5.000000e-01 : f32
    %99 = vector.broadcast %cst_47 : f32 to vector<200x128xf32>
    %100 = arith.mulf %99, %98 : vector<200x128xf32>
    %101 = math.tanh %100 : vector<200x128xf32>
    %cst_48 = arith.constant 5.000000e-01 : f32
    %102 = vector.broadcast %cst_48 : f32 to vector<200x128xf32>
    %103 = arith.mulf %102, %101 : vector<200x128xf32>
    %cst_49 = arith.constant 5.000000e-01 : f32
    %104 = vector.broadcast %cst_49 : f32 to vector<200x128xf32>
    %105 = arith.addf %103, %104 : vector<200x128xf32>
    %c0_50 = arith.constant 0 : index
    %c0_51 = arith.constant 0 : index
    %106 = vector.load %arg10[%c0_50, %c0_51] : memref<128x128xf32, #tpu.memory_space<vmem>>, vector<128x128xf32>
    %cst_52 = arith.constant dense<0.000000e+00> : vector<200x128xf32>
    %107 = tpu.matmul %105, %106, %cst_52 {dimension_numbers = #tpu.dot_dimension_numbers<[1], [0], [0], [1], [0, 0, 1, 1], [], []>} : vector<200x128xf32>, vector<128x128xf32>, vector<200x128xf32> -> vector<200x128xf32>
    %c0_53 = arith.constant 0 : index
    %c0_54 = arith.constant 0 : index
    %108 = vector.load %arg11[%c0_53, %c0_54] : memref<1x128xf32, #tpu.memory_space<vmem>>, vector<1x128xf32>
    %109 = vector.broadcast %108 : vector<1x128xf32> to vector<200x128xf32>
    %110 = arith.addf %107, %109 : vector<200x128xf32>
    %cst_55 = arith.constant 5.000000e-01 : f32
    %111 = vector.broadcast %cst_55 : f32 to vector<200x128xf32>
    %112 = arith.mulf %111, %110 : vector<200x128xf32>
    %113 = math.tanh %112 : vector<200x128xf32>
    %cst_56 = arith.constant 5.000000e-01 : f32
    %114 = vector.broadcast %cst_56 : f32 to vector<200x128xf32>
    %115 = arith.mulf %114, %113 : vector<200x128xf32>
    %cst_57 = arith.constant 5.000000e-01 : f32
    %116 = vector.broadcast %cst_57 : f32 to vector<200x128xf32>
    %117 = arith.addf %115, %116 : vector<200x128xf32>
    %c0_58 = arith.constant 0 : index
    %c0_59 = arith.constant 0 : index
    %118 = vector.load %arg12[%c0_58, %c0_59] : memref<200x128xf32, #tpu.memory_space<vmem>>, vector<200x128xf32>
    tpu.vector_store %arg12[%c0_58, %c0_59], %117 {strides = array<i32>} : memref<200x128xf32, #tpu.memory_space<vmem>>, vector<200x128xf32>,
    return
  }
}

</mosaic_0001>

<bundles_post_ra>
// kernel: tabular_mlp_forward.1
= control target key start
LH: loop header
LB: loop body
LE: loop exit
PB: predicated region body
PF: predicated region fallthrough
CT: control target
= control target key end

     0   :  { %vm72_vm0 = vcmask 130048   ;;  %s3007_s1 = inlined_call_operand.vmem [shape: f32[16,128], index: 1, kind: input, shape index: {}]   ;;  %s3008_s0 = inlined_call_operand.vmem [shape: f32[200,16], index: 0, kind: input, shape index: {}]   ;;  %s3009_s2 = inlined_call_operand.vmem [shape: f32[1,128], index: 2, kind: input, shape index: {}]   ;;  %s3010_s4 = inlined_call_operand.vmem [shape: f32[128,128], index: 4, kind: input, shape index: {}]   ;;  %s3011_s3 = inlined_call_operand.vmem [shape: f32[2,128], index: 3, kind: input, shape index: {}]   ;;  %s3012_s5 = inlined_call_operand.vmem [shape: f32[1,128], index: 5, kind: input, shape index: {}]   ;;  %s3013_s7 = inlined_call_operand.vmem [shape: f32[128,128], index: 7, kind: input, shape index: {}]   ;;  %s3014_s6 = inlined_call_operand.vmem [shape: f32[2,128], index: 6, kind: input, shape index: {}]   ;;  %s3015_s8 = inlined_call_operand.vmem [shape: f32[1,128], index: 8, kind: input, shape index: {}]   ;;  %s3016_s10 = inlined_call_operand.vmem [shape: f32[128,128], index: 10, kind: input, shape index: {}]   ;;  %s3017_s9 = inlined_call_operand.vmem [shape: f32[2,128], index: 9, kind: input, shape index: {}]   ;;  %s3018_s11 = inlined_call_operand.vmem [shape: f32[1,128], index: 11, kind: input, shape index: {}]   ;;  %s3019_s12 = inlined_call_operand.vmem [shape: f32[200,128], index: 12, kind: output, shape index: {}]  }
   0x1   :  { %v67_v0 = vld [vmem:[%s3007_s1 + $0x8] sm:$0xff]  ;;  %v66_v1 = vld [vmem:[%s3007_s1] sm:$0xff]  ;;  %v43_v4 = vld [vmem:[%s3008_s0 + $0x10] sm:$0xff] }
   0x2   :  { %162 = vmatpush.msra.mxu0 %v67_v0  ;;  %v41_v2 = vld [vmem:[%s3008_s0] sm:$0xff]  ;;  %v42_v3 = vld [vmem:[%s3008_s0 + $0x8] sm:$0xff]  ;;  %v44_v5 = vld [vmem:[%s3008_s0 + $0x18] sm:$0xff] }
   0x3   :  { %v45_v6 = vld [vmem:[%s3008_s0 + $0x20] sm:$0xff]  ;;  %v46_v7 = vld [vmem:[%s3008_s0 + $0x28] sm:$0xff]  ;;  %v47_v8 = vld [vmem:[%s3008_s0 + $0x30] sm:$0xff] }
   0x4   :  { %163 = vmatpush.msra.mxu0 %v66_v1  ;;  %v48_v9 = vld [vmem:[%s3008_s0 + $0x38] sm:$0xff]  ;;  %v49_v10 = vld [vmem:[%s3008_s0 + $0x40] sm:$0xff]  ;;  %v50_v11 = vld [vmem:[%s3008_s0 + $0x48] sm:$0xff] }
   0x5   :  { %1545 = vmatmul.msk.f32.vlgmr.msra.gmra.mxu0 %vm72_vm0, %v41_v2  ;;  %v51_v12 = vld [vmem:[%s3008_s0 + $0x50] sm:$0xff]  ;;  %v52_v13 = vld [vmem:[%s3008_s0 + $0x58] sm:$0xff]  ;;  %v53_v14 = vld [vmem:[%s3008_s0 + $0x60] sm:$0xff] }
   0x6   :  { %v54_v15 = vld [vmem:[%s3008_s0 + $0x68] sm:$0xff]  ;;  %v55_v16 = vld [vmem:[%s3008_s0 + $0x70] sm:$0xff]  ;;  %v56_v17 = vld [vmem:[%s3008_s0 + $0x78] sm:$0xff] }
   0x7   :  { %v57_v19 = vld [vmem:[%s3008_s0 + $0x80] sm:$0xff]  ;;  %v58_v21 = vld [vmem:[%s3008_s0 + $0x88] sm:$0xff]  ;;  %v59_v23 = vld [vmem:[%s3008_s0 + $0x90] sm:$0xff] }
   0x8   :  { %v60_v25 = vld [vmem:[%s3008_s0 + $0x98] sm:$0xff]  ;;  %v61_v27 = vld [vmem:[%s3008_s0 + $0xa0] sm:$0xff]  ;;  %v62_v29 = vld [vmem:[%s3008_s0 + $0xa8] sm:$0xff] }
   0x9   :  { %v63_v31 = vld [vmem:[%s3008_s0 + $0xb0] sm:$0xff]  ;;  %v64_v33 = vld [vmem:[%s3008_s0 + $0xb8] sm:$0xff]  ;;  %v65_v35 = vld [vmem:[%s3008_s0 + $0xc0] sm:$0xff] }
   0xa   :  { %v1570_v45 = vld [vmem:[%s3009_s2] ss:$0 sm:$0xff] }
   0xd   :  { %1546 = vmatmul.msk.f32.gmra.mxu0 %vm72_vm0, %v42_v3 }
  0x15   :  { %1547 = vmatmul.msk.f32.gmra.mxu0 %vm72_vm0, %v43_v4 }
  0x1d   :  { %1548 = vmatmul.msk.f32.gmra.mxu0 %vm72_vm0, %v44_v5 }
  0x25   :  { %1549 = vmatmul.msk.f32.gmra.mxu0 %vm72_vm0, %v45_v6 }
  0x2d   :  { %1550 = vmatmul.msk.f32.gmra.mxu0 %vm72_vm0, %v46_v7 }
  0x35   :  { %1551 = vmatmul.msk.f32.gmra.mxu0 %vm72_vm0, %v47_v8 }
  0x3d   :  { %1552 = vmatmul.msk.f32.gmra.mxu0 %vm72_vm0, %v48_v9 }
  0x45   :  { %1553 = vmatmul.msk.f32.gmra.mxu0 %vm72_vm0, %v49_v10 }
  0x4d   :  { %1554 = vmatmul.msk.f32.gmra.mxu0 %vm72_vm0, %v50_v11 }
  0x55   :  { %1555 = vmatmul.msk.f32.gmra.mxu0 %vm72_vm0, %v51_v12 }
  0x5d   :  { %1556 = vmatmul.msk.f32.gmra.mxu0 %vm72_vm0, %v52_v13 }
  0x65   :  { %1557 = vmatmul.msk.f32.gmra.mxu0 %vm72_vm0, %v53_v14 }
  0x6d   :  { %1558 = vmatmul.msk.f32.gmra.mxu0 %vm72_vm0, %v54_v15 }
  0x75   :  { %1559 = vmatmul.msk.f32.gmra.mxu0 %vm72_vm0, %v55_v16 }
  0x7d   :  { %1560 = vmatmul.msk.f32.gmra.mxu0 %vm72_vm0, %v56_v17 }
  0x82   :  { %v165_v18 = vpop.f32.mrf.mxu0 }
  0x83   :  { %v1956_v48 = vadd.f32 %v1570_v45, %v165_v18 }
  0x85   :  { %1561 = vmatmul.msk.f32.gmra.mxu0 %vm72_vm0, %v57_v19 }
  0x8a   :  { %v168_v20 = vpop.f32.mrf.mxu0 }
  0x8b   :  { %v1954_v47 = vadd.f32 %v1570_v45, %v168_v20 }
  0x8d   :  { %1562 = vmatmul.msk.f32.gmra.mxu0 %vm72_vm0, %v58_v21  ;;  %v240_v50 = vadd.f32 %v1954_v47, %v1956_v48 }
  0x92   :  { %v171_v22 = vpop.f32.mrf.mxu0 }
  0x93   :  { %v1958_v49 = vadd.f32 %v1570_v45, %v171_v22 }
  0x95   :  { %1563 = vmatmul.msk.f32.gmra.mxu0 %vm72_vm0, %v59_v23  ;;  %v241_v52 = vadd.f32 %v240_v50, %v1958_v49 }
  0x9a   :  { %v174_v24 = vpop.f32.mrf.mxu0 }
  0x9b   :  { %v1962_v51 = vadd.f32 %v1570_v45, %v174_v24 }
  0x9d   :  { %1564 = vmatmul.msk.f32.gmra.mxu0 %vm72_vm0, %v60_v25  ;;  %v242_v55 = vadd.f32 %v241_v52, %v1962_v51 }
  0xa2   :  { %v177_v26 = vpop.f32.mrf.mxu0 }
  0xa3   :  { %v1965_v53 = vadd.f32 %v1570_v45, %v177_v26 }
  0xa5   :  { %1565 = vmatmul.msk.f32.gmra.mxu0 %vm72_vm0, %v61_v27  ;;  %v243_v57 = vadd.f32 %v242_v55, %v1965_v53 }
  0xaa   :  { %v180_v28 = vpop.f32.mrf.mxu0 }
  0xab   :  { %v1968_v56 = vadd.f32 %v1570_v45, %v180_v28 }
  0xad   :  { %1566 = vmatmul.msk.f32.gmra.mxu0 %vm72_vm0, %v62_v29  ;;  %v244_v59 = vadd.f32 %v243_v57, %v1968_v56 }
  0xb2   :  { %v183_v30 = vpop.f32.mrf.mxu0 }
  0xb3   :  { %v1971_v58 = vadd.f32 %v1570_v45, %v183_v30 }
  0xb5   :  { %1567 = vmatmul.msk.f32.gmra.mxu0 %vm72_vm0, %v63_v31  ;;  %v245_v61 = vadd.f32 %v244_v59, %v1971_v58 }
  0xba   :  { %v186_v32 = vpop.f32.mrf.mxu0 }
  0xbb   :  { %v1974_v60 = vadd.f32 %v1570_v45, %v186_v32 }
  0xbd   :  { %1568 = vmatmul.msk.f32.gmra.mxu0 %vm72_vm0, %v64_v33  ;;  %v246_v0 = vadd.f32 %v245_v61, %v1974_v60 }
  0xc2   :  { %v189_v34 = vpop.f32.mrf.mxu0 }
  0xc3   :  { %v1977_v62 = vadd.f32 %v1570_v45, %v189_v34 }
  0xc5   :  { %1569 = vmatmul.msk.f32.gmra.mxu0 %vm72_vm0, %v65_v35  ;;  %v247_v2 = vadd.f32 %v246_v0, %v1977_v62 }
  0xca   :  { %v192_v36 = vpop.f32.mrf.mxu0 }
  0xcb   :  { %v1980_v1 = vadd.f32 %v1570_v45, %v192_v36 }
  0xcd   :  { %v248_v4 = vadd.f32 %v247_v2, %v1980_v1 }
  0xd2   :  { %v195_v37 = vpop.f32.mrf.mxu0 }
  0xd3   :  { %v1983_v3 = vadd.f32 %v1570_v45, %v195_v37 }
  0xd5   :  { %v249_v6 = vadd.f32 %v248_v4, %v1983_v3 }
  0xda   :  { %v198_v38 = vpop.f32.mrf.mxu0 }
  0xdb   :  { %v1986_v5 = vadd.f32 %v1570_v45, %v198_v38 }
  0xdd   :  { %v250_v9 = vadd.f32 %v249_v6, %v1986_v5 }
  0xe2   :  { %v201_v39 = vpop.f32.mrf.mxu0 }
  0xe3   :  { %v1989_v7 = vadd.f32 %v1570_v45, %v201_v39 }
  0xe5   :  { %v251_v11 = vadd.f32 %v250_v9, %v1989_v7 }
  0xea   :  { %v204_v40 = vpop.f32.mrf.mxu0 }
  0xeb   :  { %v1992_v10 = vadd.f32 %v1570_v45, %v204_v40 }
  0xed   :  { %v252_v13 = vadd.f32 %v251_v11, %v1992_v10 }
  0xf2   :  { %v207_v41 = vpop.f32.mrf.mxu0 }
  0xf3   :  { %v1995_v12 = vadd.f32 %v1570_v45, %v207_v41 }
  0xf5   :  { %v253_v15 = vadd.f32 %v252_v13, %v1995_v12 }
  0xfa   :  { %v210_v42 = vpop.f32.mrf.mxu0 }
  0xfb   :  { %v1998_v14 = vadd.f32 %v1570_v45, %v210_v42 }
  0xfd   :  { %v254_v18 = vadd.f32 %v253_v15, %v1998_v14 }
 0x102   :  { %v213_v43 = vpop.f32.mrf.mxu0 }
 0x103   :  { %v2001_v16 = vadd.f32 %v1570_v45, %v213_v43 }
 0x105   :  { %v255_v20 = vadd.f32 %v254_v18, %v2001_v16 }
 0x10a   :  { %v216_v44 = vpop.f32.mrf.mxu0 }
 0x10b   :  { %v2004_v19 = vadd.f32 %v1570_v45, %v216_v44 }
 0x10d   :  { %v256_v22 = vadd.f32 %v255_v20, %v2004_v19 }
 0x112   :  { %v219_v46 = vpop.f32.mrf.mxu0 }
 0x113   :  { %v2007_v21 = vadd.f32 %v1570_v45, %v219_v46 }
 0x115   :  { %v257_v24 = vadd.f32 %v256_v22, %v2007_v21 }
 0x11a   :  { %v222_v54 = vpop.f32.mrf.mxu0 }
 0x11b   :  { %v2010_v23 = vadd.f32 %v1570_v45, %v222_v54 }
 0x11d   :  { %v258_v27 = vadd.f32 %v257_v24, %v2010_v23 }
 0x122   :  { %v225_v63 = vpop.f32.mrf.mxu0 }
 0x123   :  { %v2013_v25 = vadd.f32 %v1570_v45, %v225_v63 }
 0x125   :  { %v259_v29 = vadd.f32 %v258_v27, %v2013_v25 }
 0x12a   :  { %v228_v8 = vpop.f32.mrf.mxu0 }
 0x12b   :  { %v2016_v28 = vadd.f32 %v1570_v45, %v228_v8 }
 0x12d   :  { %v260_v31 = vadd.f32 %v259_v29, %v2016_v28 }
 0x132   :  { %v231_v17 = vpop.f32.mrf.mxu0 }
 0x133   :  { %v2019_v30 = vadd.f32 %v1570_v45, %v231_v17 }
 0x135   :  { %v261_v33 = vadd.f32 %v260_v31, %v2019_v30 }
 0x13a   :  { %v234_v26 = vpop.f32.mrf.mxu0 }
 0x13b   :  { %v2022_v32 = vadd.f32 %v1570_v45, %v234_v26 }
 0x13d   :  { %v262_v35 = vadd.f32 %v261_v33, %v2022_v32 }
 0x142   :  { %v237_v34 = vpop.f32.mrf.mxu0 }
 0x143   :  { %v2026_v36 = vadd.f32 %v1570_v45, %v237_v34 }
 0x145   :  { %v263_v37 = vadd.f32 %v262_v35, %v2026_v36 }
 0x147   :  { %v264_v38 = vrot.slane %v263_v37, 4 }
 0x149   :  { %v265_v39 = vadd.f32 %v264_v38, %v263_v37 }
 0x14b   :  { %v266_v40 = vrot.slane %v265_v39, 2 }
 0x14d   :  { %v267_v41 = vadd.f32 %v266_v40, %v265_v39 }
 0x14f   :  { %v268_v42 = vrot.slane %v267_v41, 1 }
 0x151   :  { %v269_v43 = vadd.f32 %v268_v42, %v267_v41 }
 0x153   :  { %v2029_v44 = vmul.f32 0.005, %v269_v43 }
 0x155   :  { %v271_v46 = vsub.f32 %v1956_v48, %v2029_v44  ;;  %v272_v50 = vsub.f32 %v1954_v47, %v2029_v44  ;;  %v273_v45 = vsub.f32 %v1958_v49, %v2029_v44  ;;  %v274_v55 = vsub.f32 %v1962_v51, %v2029_v44 }
 0x156   :  { %v275_v57 = vsub.f32 %v1965_v53, %v2029_v44  ;;  %v276_v63 = vsub.f32 %v1968_v56, %v2029_v44  ;;  %v277_v4 = vsub.f32 %v1971_v58, %v2029_v44  ;;  %v278_v9 = vsub.f32 %v1974_v60, %v2029_v44 }
 0x157   :  { %v296_v52 = vmul.f32 %v271_v46, %v271_v46  ;;  %v297_v54 = vmul.f32 %v272_v50, %v272_v50  ;;  %v298_v59 = vmul.f32 %v273_v45, %v273_v45  ;;  %v299_v0 = vmul.f32 %v274_v55, %v274_v55 }
 0x158   :  { %v300_v6 = vmul.f32 %v275_v57, %v275_v57  ;;  %v301_v11 = vmul.f32 %v276_v63, %v276_v63  ;;  %v279_v15 = vsub.f32 %v1977_v62, %v2029_v44  ;;  %v302_v17 = vmul.f32 %v277_v4, %v277_v4 }
 0x159   :  { %v321_v61 = vadd.f32 %v297_v54, %v296_v52  ;;  %v280_v20 = vsub.f32 %v1980_v1, %v2029_v44  ;;  %v303_v22 = vmul.f32 %v278_v9, %v278_v9  ;;  %v281_v26 = vsub.f32 %v1983_v3, %v2029_v44 }
 0x15a   :  { %v304_v27 = vmul.f32 %v279_v15, %v279_v15  ;;  %v282_v31 = vsub.f32 %v1986_v5, %v2029_v44  ;;  %v283_v35 = vsub.f32 %v1989_v7, %v2029_v44  ;;  %v284_v39 = vsub.f32 %v1992_v10, %v2029_v44 }
 0x15b   :  { %v322_v2 = vadd.f32 %v321_v61, %v298_v59  ;;  %v305_v33 = vmul.f32 %v280_v20, %v280_v20  ;;  %v306_v37 = vmul.f32 %v281_v26, %v281_v26  ;;  %v285_v42 = vsub.f32 %v1995_v12, %v2029_v44 }
 0x15c   :  { %v307_v40 = vmul.f32 %v282_v31, %v282_v31  ;;  %v308_v43 = vmul.f32 %v283_v35, %v283_v35  ;;  %v286_v50 = vsub.f32 %v1998_v14, %v2029_v44  ;;  %v309_v45 = vmul.f32 %v284_v39, %v284_v39  ;;  %v535_v39 = vld [vmem:[%s3010_s4 + $0x78] sm:$0xff] }
 0x15d   :  { %v323_v8 = vadd.f32 %v322_v2, %v299_v0  ;;  %v287_v54 = vsub.f32 %v2001_v16, %v2029_v44  ;;  %v310_v55 = vmul.f32 %v285_v42, %v285_v42  ;;  %v288_v59 = vsub.f32 %v2004_v19, %v2029_v44  ;;  %540 = vmatpush.msra.mxu1 %v535_v39  ;;  %v534_v42 = vld [vmem:[%s3010_s4 + $0x70] sm:$0xff] }
 0x15e   :  { %v311_v61 = vmul.f32 %v286_v50, %v286_v50  ;;  %v289_v0 = vsub.f32 %v2007_v21, %v2029_v44 }
 0x15f   :  { %v324_v13 = vadd.f32 %v323_v8, %v300_v6  ;;  %v312_v2 = vmul.f32 %v287_v54, %v287_v54  ;;  %v290_v6 = vsub.f32 %v2010_v23, %v2029_v44  ;;  %v313_v8 = vmul.f32 %v288_v59, %v288_v59  ;;  %541 = vmatpush.msra.mxu1 %v534_v42  ;;  %v531_v54 = vld [vmem:[%s3010_s4 + $0x58] sm:$0xff] }
 0x161   :  { %v325_v18 = vadd.f32 %v324_v13, %v301_v11  ;;  %v291_v11 = vsub.f32 %v2013_v25, %v2029_v44  ;;  %v314_v13 = vmul.f32 %v289_v0, %v289_v0  ;;  %v528_v0 = vld [vmem:[%s3010_s4 + $0x40] sm:$0xff] }
 0x163   :  { %v326_v24 = vadd.f32 %v325_v18, %v302_v17  ;;  %v292_v17 = vsub.f32 %v2016_v28, %v2029_v44  ;;  %v315_v18 = vmul.f32 %v290_v6, %v290_v6  ;;  %v526_v6 = vld [vmem:[%s3010_s4 + $0x30] sm:$0xff] }
 0x165   :  { %v327_v29 = vadd.f32 %v326_v24, %v303_v22  ;;  %v293_v22 = vsub.f32 %v2019_v30, %v2029_v44  ;;  %v316_v24 = vmul.f32 %v291_v11, %v291_v11 }
 0x167   :  { %v328_v34 = vadd.f32 %v327_v29, %v304_v27  ;;  %v294_v27 = vsub.f32 %v2022_v32, %v2029_v44  ;;  %v317_v29 = vmul.f32 %v292_v17, %v292_v17  ;;  %v522_v17 = vld [vmem:[%s3010_s4 + $0x10] sm:$0xff] }
 0x169   :  { %v329_v38 = vadd.f32 %v328_v34, %v305_v33  ;;  %v295_v33 = vsub.f32 %v2026_v36, %v2029_v44  ;;  %v318_v34 = vmul.f32 %v293_v22, %v293_v22 }
 0x16b   :  { %v330_v41 = vadd.f32 %v329_v38, %v306_v37  ;;  %v319_v37 = vmul.f32 %v294_v27, %v294_v27 }
 0x16d   :  { %v331_v46 = vadd.f32 %v330_v41, %v307_v40  ;;  %v320_v40 = vmul.f32 %v295_v33, %v295_v33 }
 0x16f   :  { %v332_v52 = vadd.f32 %v331_v46, %v308_v43  ;;  %v533_v46 = vld [vmem:[%s3010_s4 + $0x68] sm:$0xff] }
 0x170   :  { %542 = vmatpush.msra.mxu1 %v533_v46 }
 0x171   :  { %v333_v57 = vadd.f32 %v332_v52, %v309_v45  ;;  %v532_v45 = vld [vmem:[%s3010_s4 + $0x60] sm:$0xff] }
 0x172   :  { %543 = vmatpush.msra.mxu1 %v532_v45 }
 0x173   :  { %v334_v63 = vadd.f32 %v333_v57, %v310_v55  ;;  %v530_v57 = vld [vmem:[%s3010_s4 + $0x50] sm:$0xff] }
 0x174   :  { %544 = vmatpush.msra.mxu1 %v531_v54 }
 0x175   :  { %v335_v4 = vadd.f32 %v334_v63, %v311_v61  ;;  %v529_v61 = vld [vmem:[%s3010_s4 + $0x48] sm:$0xff] }
 0x176   :  { %545 = vmatpush.msra.mxu1 %v530_v57 }
 0x177   :  { %v336_v9 = vadd.f32 %v335_v4, %v312_v2  ;;  %v527_v4 = vld [vmem:[%s3010_s4 + $0x38] sm:$0xff] }
 0x178   :  { %546 = vmatpush.msra.mxu1 %v529_v61 }
 0x179   :  { %v337_v15 = vadd.f32 %v336_v9, %v313_v8  ;;  %v525_v9 = vld [vmem:[%s3010_s4 + $0x28] sm:$0xff] }
 0x17a   :  { %547 = vmatpush.msra.mxu1 %v528_v0 }
 0x17b   :  { %v338_v20 = vadd.f32 %v337_v15, %v314_v13  ;;  %v524_v13 = vld [vmem:[%s3010_s4 + $0x20] sm:$0xff]  ;;  %v523_v15 = vld [vmem:[%s3010_s4 + $0x18] sm:$0xff] }
 0x17c   :  { %548 = vmatpush.msra.mxu1 %v527_v4 }
 0x17d   :  { %v339_v26 = vadd.f32 %v338_v20, %v315_v18  ;;  %v521_v18 = vld [vmem:[%s3010_s4 + $0x8] sm:$0xff] }
 0x17e   :  { %549 = vmatpush.msra.mxu1 %v526_v6 }
 0x17f   :  { %v340_v31 = vadd.f32 %v339_v26, %v316_v24  ;;  %v520_v24 = vld [vmem:[%s3010_s4] sm:$0xff] }
 0x180   :  { %550 = vmatpush.msra.mxu1 %v525_v9 }
 0x181   :  { %v341_v35 = vadd.f32 %v340_v31, %v317_v29  ;;  %v352_v31 = vld [vmem:[%s3011_s3] sm:$0x1] }
 0x182   :  { %551 = vmatpush.msra.mxu1 %v524_v13 }
 0x183   :  { %v342_v38 = vadd.f32 %v341_v35, %v318_v34 }
 0x184   :  { %552 = vmatpush.msra.mxu1 %v523_v15 }
 0x185   :  { %v343_v41 = vadd.f32 %v342_v38, %v319_v37  ;;  %v365_v37 = vld [vmem:[%s3011_s3 + $0x1] sm:$0x1] }
 0x186   :  { %553 = vmatpush.msra.mxu1 %v522_v17 }
 0x187   :  { %v344_v43 = vadd.f32 %v343_v41, %v320_v40 }
 0x188   :  { %554 = vmatpush.msra.mxu1 %v521_v18 }
 0x189   :  { %v345_v50 = vrot.slane %v344_v43, 4 }
 0x18a   :  { %555 = vmatpush.msra.mxu1 %v520_v24 }
 0x18b   :  { %v346_v52 = vadd.f32 %v345_v50, %v344_v43 }
 0x18d   :  { %v347_v55 = vrot.slane %v346_v52, 2 }
 0x18f   :  { %v348_v59 = vadd.f32 %v347_v55, %v346_v52 }
 0x191   :  { %v349_v63 = vrot.slane %v348_v59, 1 }
 0x193   :  { %v350_v2 = vadd.f32 %v349_v63, %v348_v59 }
 0x195   :  { %v351_v8 = vmul.f32 0.005, %v350_v2 }
 0x197   :  { %v353_v11 = vadd.f32 1e-05, %v351_v8 }
 0x199   :  { %1574 = vrsqrt.f32 %v353_v11  ;;  %vm360_vm2 = vweird.f32 %v353_v11 }
 0x19f   :  { %v1575_v20 = vpop.eup %1574 }
 0x1a0   :  { %v355_v22 = vmul.f32 %v1575_v20, %v353_v11  ;;  %vm361_vm1 = vweird.f32 %v1575_v20 }
 0x1a1   :  { %vm362_vm3 = vmor %vm360_vm2, %vm361_vm1 }
 0x1a2   :  { %v356_v26 = vmul.f32 %v1575_v20, %v355_v22 }
 0x1a4   :  { %v357_v27 = vmul.f32 0.5, %v356_v26 }
 0x1a6   :  { %v358_v29 = vsub.f32 1.5, %v357_v27 }
 0x1a8   :  { %v359_v33 = vmul.f32 %v1575_v20, %v358_v29 }
 0x1aa   :  { %v363_v34 = vsel %vm362_vm3, %v1575_v20, %v359_v33 }
 0x1ab   :  { %v364_v35 = vmul.f32 %v363_v34, %v352_v31 }
 0x1ad   :  { %v366_v38 = vmul.f32 %v364_v35, %v2029_v44  ;;  %v2136_v39 = vperm.slane %v364_v35, 0 }
 0x1af   :  { %v367_v40 = vsub.f32 %v365_v37, %v366_v38  ;;  %v393_v41 = vmul.f32 %v2136_v39, %v2026_v36  ;;  %v369_v43 = vmul.f32 %v2136_v39, %v1956_v48  ;;  %v370_v46 = vmul.f32 %v2136_v39, %v1954_v47 }
 0x1b0   :  { %v377_v54 = vmul.f32 %v2136_v39, %v1977_v62  ;;  %v378_v36 = vmul.f32 %v2136_v39, %v1980_v1  ;;  %v379_v48 = vmul.f32 %v2136_v39, %v1983_v3  ;;  %v380_v47 = vmul.f32 %v2136_v39, %v1986_v5 }
 0x1b1   :  { %v2140_v42 = vperm.slane %v367_v40, 0  ;;  %v381_v55 = vmul.f32 %v2136_v39, %v1989_v7  ;;  %v371_v62 = vmul.f32 %v2136_v39, %v1958_v49  ;;  %v382_v7 = vmul.f32 %v2136_v39, %v1992_v10 }
 0x1b2   :  { %v383_v49 = vmul.f32 %v2136_v39, %v1995_v12  ;;  %v384_v2 = vmul.f32 %v2136_v39, %v1998_v14  ;;  %v385_v4 = vmul.f32 %v2136_v39, %v2001_v16  ;;  %v386_v6 = vmul.f32 %v2136_v39, %v2004_v19 }
 0x1b3   :  { %v2147_v50 = vadd.f32 %v2140_v42, %v393_v41  ;;  %v395_v45 = vadd.f32 %v2140_v42, %v369_v43  ;;  %v396_v44 = vadd.f32 %v2140_v42, %v370_v46  ;;  %v2162_v59 = vadd.f32 %v2140_v42, %v377_v54 }
 0x1b4   :  { %v2165_v61 = vadd.f32 %v2140_v42, %v378_v36  ;;  %v2170_v1 = vadd.f32 %v2140_v42, %v379_v48  ;;  %v2173_v3 = vadd.f32 %v2140_v42, %v380_v47  ;;  %v2176_v5 = vadd.f32 %v2140_v42, %v381_v55 }
 0x1b5   :  { %v420_v52 = vmul.f32 0.5, %v395_v45  ;;  %v421_v57 = vmul.f32 0.5, %v396_v44  ;;  %v397_v63 = vadd.f32 %v2140_v42, %v371_v62  ;;  %v2182_v0 = vadd.f32 %v2140_v42, %v382_v7 }
 0x1b6   :  { %v2193_v10 = vadd.f32 %v2140_v42, %v383_v49  ;;  %v2196_v9 = vadd.f32 %v2140_v42, %v384_v2  ;;  %v2199_v13 = vadd.f32 %v2140_v42, %v385_v4  ;;  %v2202_v12 = vadd.f32 %v2140_v42, %v386_v6 }
 0x1b7   :  { %1576 = vtanh.f32 %v420_v52  ;;  %v422_v14 = vmul.f32 0.5, %v397_v63  ;;  %v387_v16 = vmul.f32 %v2136_v39, %v2007_v21  ;;  %v372_v17 = vmul.f32 %v2136_v39, %v1962_v51 }
 0x1b8   :  { %1578 = vtanh.f32 %v421_v57  ;;  %v388_v22 = vmul.f32 %v2136_v39, %v2010_v23  ;;  %v389_v21 = vmul.f32 %v2136_v39, %v2013_v25  ;;  %v373_v33 = vmul.f32 %v2136_v39, %v1965_v53 }
 0x1b9   :  { %v2209_v18 = vadd.f32 %v2140_v42, %v387_v16  ;;  %1580 = vtanh.f32 %v422_v14  ;;  %v398_v20 = vadd.f32 %v2140_v42, %v372_v17  ;;  %v390_v34 = vmul.f32 %v2136_v39, %v2016_v28 }
 0x1ba   :  { %v2215_v26 = vadd.f32 %v2140_v42, %v388_v22  ;;  %v2220_v51 = vadd.f32 %v2140_v42, %v389_v21  ;;  %v399_v23 = vadd.f32 %v2140_v42, %v373_v33  ;;  %v391_v25 = vmul.f32 %v2136_v39, %v2019_v30 }
 0x1bb   :  { %v423_v27 = vmul.f32 0.5, %v398_v20  ;;  %v2228_v35 = vadd.f32 %v2140_v42, %v390_v34  ;;  %v392_v38 = vmul.f32 %v2136_v39, %v2022_v32  ;;  %v374_v46 = vmul.f32 %v2136_v39, %v1968_v56 }
 0x1bc   :  { %v2235_v40 = vadd.f32 %v2140_v42, %v391_v25  ;;  %v424_v28 = vmul.f32 0.5, %v399_v23  ;;  %v375_v54 = vmul.f32 %v2136_v39, %v1971_v58  ;;  %v376_v56 = vmul.f32 %v2136_v39, %v1974_v60 }
 0x1bd   :  { %v1577_v8 = vpop.eup %1576  ;;  %1582 = vtanh.f32 %v423_v27  ;;  %v2238_v53 = vadd.f32 %v2140_v42, %v392_v38  ;;  %v400_v30 = vadd.f32 %v2140_v42, %v374_v46  ;;  %v428_v4 = vmul.f32 0.5, %v2162_v59 }
 0x1be   :  { %v470_v11 = vmul.f32 0.5, %v1577_v8  ;;  %v1579_v19 = vpop.eup %1578  ;;  %1584 = vtanh.f32 %v424_v28  ;;  %v401_v36 = vadd.f32 %v2140_v42, %v375_v54  ;;  %v402_v62 = vadd.f32 %v2140_v42, %v376_v56 }
 0x1bf   :  { %v471_v24 = vmul.f32 0.5, %v1579_v19  ;;  %v1581_v31 = vpop.eup %1580  ;;  %v425_v44 = vmul.f32 0.5, %v400_v30  ;;  %v429_v60 = vmul.f32 0.5, %v2165_v61  ;;  %v431_v59 = vmul.f32 0.5, %v2173_v3 }
 0x1c0   :  { %v495_v15 = vadd.f32 0.5, %v470_v11  ;;  %v472_v37 = vmul.f32 0.5, %v1581_v31  ;;  %v426_v47 = vmul.f32 0.5, %v401_v36  ;;  %v427_v63 = vmul.f32 0.5, %v402_v62 }
 0x1c1   :  { %v496_v29 = vadd.f32 0.5, %v471_v24  ;;  %1586 = vtanh.f32 %v425_v44  ;;  %v432_v61 = vmul.f32 0.5, %v2176_v5  ;;  %v434_v3 = vmul.f32 0.5, %v2193_v10 }
 0x1c2   :  { %556 = vmatmul.f32.vlgmr.msra.gmra.mxu1 %v495_v15  ;;  %v497_v41 = vadd.f32 0.5, %v472_v37  ;;  %1588 = vtanh.f32 %v426_v47  ;;  %v430_v15 = vmul.f32 0.5, %v2170_v1  ;;  %v433_v1 = vmul.f32 0.5, %v2182_v0 }
 0x1c3   :  { %v1583_v43 = vpop.eup %1582  ;;  %1590 = vtanh.f32 %v427_v63  ;;  %v435_v5 = vmul.f32 0.5, %v2196_v9  ;;  %v436_v0 = vmul.f32 0.5, %v2199_v13  ;;  %v437_v10 = vmul.f32 0.5, %v2202_v12 }
 0x1c4   :  { %v473_v45 = vmul.f32 0.5, %v1583_v43  ;;  %v1585_v32 = vpop.eup %1584  ;;  %1592 = vtanh.f32 %v428_v4  ;;  %v439_v47 = vmul.f32 0.5, %v2215_v26  ;;  %v440_v62 = vmul.f32 0.5, %v2220_v51 }
 0x1c5   :  { %v474_v48 = vmul.f32 0.5, %v1585_v32  ;;  %1594 = vtanh.f32 %v429_v60  ;;  %v438_v32 = vmul.f32 0.5, %v2209_v18 }
 0x1c6   :  { %v498_v52 = vadd.f32 0.5, %v473_v45  ;;  %1596 = vtanh.f32 %v430_v15 }
 0x1c7   :  { %v499_v55 = vadd.f32 0.5, %v474_v48  ;;  %v1587_v57 = vpop.eup %1586  ;;  %1598 = vtanh.f32 %v431_v59 }
 0x1c8   :  { %v475_v7 = vmul.f32 0.5, %v1587_v57  ;;  %v1589_v2 = vpop.eup %1588  ;;  %1600 = vtanh.f32 %v432_v61 }
 0x1c9   :  { %v476_v58 = vmul.f32 0.5, %v1589_v2  ;;  %v1591_v8 = vpop.eup %1590  ;;  %1602 = vtanh.f32 %v433_v1  ;;  %v441_v2 = vmul.f32 0.5, %v2228_v35 }
 0x1ca   :  { %559 = vmatmul.f32.gmra.mxu1 %v496_v29  ;;  %v500_v49 = vadd.f32 0.5, %v475_v7  ;;  %v477_v11 = vmul.f32 0.5, %v1591_v8  ;;  %v1593_v14 = vpop.eup %1592  ;;  %1604 = vtanh.f32 %v434_v3  ;;  %v442_v8 = vmul.f32 0.5, %v2235_v40 }
 0x1cb   :  { %v501_v6 = vadd.f32 0.5, %v476_v58  ;;  %v478_v42 = vmul.f32 0.5, %v1593_v14  ;;  %v1595_v19 = vpop.eup %1594  ;;  %1606 = vtanh.f32 %v435_v5  ;;  %v443_v14 = vmul.f32 0.5, %v2238_v53 }
 0x1cc   :  { %v502_v39 = vadd.f32 0.5, %v477_v11  ;;  %v479_v17 = vmul.f32 0.5, %v1595_v19  ;;  %v1597_v22 = vpop.eup %1596  ;;  %1608 = vtanh.f32 %v436_v0  ;;  %v444_v19 = vmul.f32 0.5, %v2147_v50 }
 0x1cd   :  { %v503_v16 = vadd.f32 0.5, %v478_v42  ;;  %v480_v24 = vmul.f32 0.5, %v1597_v22  ;;  %v1599_v27 = vpop.eup %1598  ;;  %1610 = vtanh.f32 %v437_v10 }
 0x1ce   :  { %v504_v20 = vadd.f32 0.5, %v479_v17  ;;  %v481_v29 = vmul.f32 0.5, %v1599_v27  ;;  %v1601_v33 = vpop.eup %1600  ;;  %1612 = vtanh.f32 %v438_v32 }
 0x1cf   :  { %v505_v21 = vadd.f32 0.5, %v480_v24  ;;  %v482_v34 = vmul.f32 0.5, %v1601_v33  ;;  %v1603_v25 = vpop.eup %1602  ;;  %1614 = vtanh.f32 %v439_v47 }
 0x1d0   :  { %v506_v31 = vadd.f32 0.5, %v481_v29  ;;  %v483_v37 = vmul.f32 0.5, %v1603_v25  ;;  %v1605_v28 = vpop.eup %1604  ;;  %1616 = vtanh.f32 %v440_v62  ;;  %v1571_v25 = vld [vmem:[%s3012_s5] ss:$0 sm:$0xff] }
 0x1d1   :  { %v507_v23 = vadd.f32 0.5, %v482_v34  ;;  %v1607_v46 = vpop.eup %1606  ;;  %1618 = vtanh.f32 %v441_v2 }
 0x1d2   :  { %562 = vmatmul.f32.gmra.mxu1 %v497_v41  ;;  %v508_v38 = vadd.f32 0.5, %v483_v37  ;;  %v484_v41 = vmul.f32 0.5, %v1605_v28  ;;  %v485_v30 = vmul.f32 0.5, %v1607_v46  ;;  %v1609_v44 = vpop.eup %1608  ;;  %1620 = vtanh.f32 %v442_v8 }
 0x1d3   :  { %v1611_v36 = vpop.eup %1610  ;;  %1622 = vtanh.f32 %v443_v14 }
 0x1d4   :  { %v509_v43 = vadd.f32 0.5, %v484_v41  ;;  %v510_v45 = vadd.f32 0.5, %v485_v30  ;;  %v487_v13 = vmul.f32 0.5, %v1611_v36  ;;  %v1613_v57 = vpop.eup %1612  ;;  %1624 = vtanh.f32 %v444_v19 }
 0x1d5   :  { %v488_v12 = vmul.f32 0.5, %v1613_v57  ;;  %v1615_v63 = vpop.eup %1614 }
 0x1d6   :  { %v489_v18 = vmul.f32 0.5, %v1615_v63  ;;  %v1617_v4 = vpop.eup %1616 }
 0x1d7   :  { %v513_v7 = vadd.f32 0.5, %v488_v12  ;;  %v490_v26 = vmul.f32 0.5, %v1617_v4  ;;  %v1619_v60 = vpop.eup %1618 }
 0x1d8   :  { %v514_v58 = vadd.f32 0.5, %v489_v18  ;;  %v491_v51 = vmul.f32 0.5, %v1619_v60  ;;  %v1621_v15 = vpop.eup %1620 }
 0x1d9   :  { %v515_v11 = vadd.f32 0.5, %v490_v26  ;;  %v492_v35 = vmul.f32 0.5, %v1621_v15  ;;  %v1623_v59 = vpop.eup %1622 }
 0x1da   :  { %565 = vmatmul.f32.gmra.mxu1 %v498_v52  ;;  %v486_v52 = vmul.f32 0.5, %v1609_v44  ;;  %v516_v42 = vadd.f32 0.5, %v491_v51  ;;  %v493_v40 = vmul.f32 0.5, %v1623_v59  ;;  %v1625_v24 = vpop.eup %1624 }
 0x1db   :  { %v517_v17 = vadd.f32 0.5, %v492_v35  ;;  %v494_v61 = vmul.f32 0.5, %v1625_v24 }
 0x1dc   :  { %v511_v54 = vadd.f32 0.5, %v486_v52  ;;  %v518_v22 = vadd.f32 0.5, %v493_v40 }
 0x1dd   :  { %v519_v53 = vadd.f32 0.5, %v494_v61 }
 0x1e2   :  { %568 = vmatmul.f32.gmra.mxu1 %v499_v55  ;;  %v512_v55 = vadd.f32 0.5, %v487_v13 }
 0x1ea   :  { %571 = vmatmul.f32.gmra.mxu1 %v500_v49 }
 0x1f2   :  { %574 = vmatmul.f32.gmra.mxu1 %v501_v6 }
 0x1fa   :  { %577 = vmatmul.f32.gmra.mxu1 %v502_v39 }
 0x202   :  { %580 = vmatmul.f32.gmra.mxu1 %v503_v16 }
 0x20a   :  { %583 = vmatmul.f32.gmra.mxu1 %v504_v20 }
 0x212   :  { %586 = vmatmul.f32.gmra.mxu1 %v505_v21 }
 0x21a   :  { %589 = vmatmul.f32.gmra.mxu1 %v506_v31 }
 0x222   :  { %592 = vmatmul.f32.gmra.mxu1 %v507_v23 }
 0x22a   :  { %595 = vmatmul.f32.gmra.mxu1 %v508_v38 }
 0x232   :  { %598 = vmatmul.f32.gmra.mxu1 %v509_v43 }
 0x23a   :  { %601 = vmatmul.f32.gmra.mxu1 %v510_v45 }
 0x23f   :  { %v2259_v9 = vpop.f32.mrf.mxu1 }
 0x240   :  { %v2274_v38 = vadd.f32 %v1571_v25, %v2259_v9 }
 0x242   :  { %604 = vmatmul.f32.gmra.mxu1 %v511_v54 }
 0x247   :  { %v560_v48 = vpop.f32.mrf.mxu1 }
 0x248   :  { %v2271_v5 = vadd.f32 %v1571_v25, %v560_v48 }
 0x24a   :  { %607 = vmatmul.f32.gmra.mxu1 %v512_v55  ;;  %v632_v41 = vadd.f32 %v2271_v5, %v2274_v38 }
 0x24f   :  { %v563_v56 = vpop.f32.mrf.mxu1 }
 0x250   :  { %v2276_v28 = vadd.f32 %v1571_v25, %v563_v56 }
 0x252   :  { %610 = vmatmul.f32.gmra.mxu1 %v513_v7  ;;  %v633_v43 = vadd.f32 %v632_v41, %v2276_v28 }
 0x257   :  { %v566_v49 = vpop.f32.mrf.mxu1 }
 0x258   :  { %v2280_v0 = vadd.f32 %v1571_v25, %v566_v49 }
 0x25a   :  { %613 = vmatmul.f32.gmra.mxu1 %v514_v58  ;;  %v634_v10 = vadd.f32 %v633_v43, %v2280_v0 }
 0x25f   :  { %v569_v6 = vpop.f32.mrf.mxu1 }
 0x260   :  { %v2283_v46 = vadd.f32 %v1571_v25, %v569_v6 }
 0x262   :  { %616 = vmatmul.f32.gmra.mxu1 %v515_v11  ;;  %v635_v44 = vadd.f32 %v634_v10, %v2283_v46 }
 0x267   :  { %v572_v39 = vpop.f32.mrf.mxu1 }
 0x268   :  { %v2286_v45 = vadd.f32 %v1571_v25, %v572_v39 }
 0x26a   :  { %619 = vmatmul.f32.gmra.mxu1 %v516_v42  ;;  %v636_v9 = vadd.f32 %v635_v44, %v2286_v45 }
 0x26f   :  { %v575_v16 = vpop.f32.mrf.mxu1 }
 0x270   :  { %v2289_v52 = vadd.f32 %v1571_v25, %v575_v16 }
 0x272   :  { %622 = vmatmul.f32.gmra.mxu1 %v517_v17  ;;  %v637_v54 = vadd.f32 %v636_v9, %v2289_v52 }
 0x277   :  { %v578_v20 = vpop.f32.mrf.mxu1 }
 0x278   :  { %v2292_v32 = vadd.f32 %v1571_v25, %v578_v20 }
 0x27a   :  { %625 = vmatmul.f32.gmra.mxu1 %v518_v22  ;;  %v638_v48 = vadd.f32 %v637_v54, %v2292_v32 }
 0x27f   :  { %v581_v21 = vpop.f32.mrf.mxu1 }
 0x280   :  { %v2295_v36 = vadd.f32 %v1571_v25, %v581_v21 }
 0x282   :  { %628 = vmatmul.f32.gmra.mxu1 %v519_v53  ;;  %v639_v55 = vadd.f32 %v638_v48, %v2295_v36 }
 0x287   :  { %v584_v27 = vpop.f32.mrf.mxu1 }
 0x288   :  { %v2298_v47 = vadd.f32 %v1571_v25, %v584_v27 }
 0x28a   :  { %v640_v12 = vadd.f32 %v639_v55, %v2298_v47 }
 0x28f   :  { %v587_v29 = vpop.f32.mrf.mxu1 }
 0x290   :  { %v2301_v57 = vadd.f32 %v1571_v25, %v587_v29 }
 0x292   :  { %v641_v62 = vadd.f32 %v640_v12, %v2301_v57 }
 0x297   :  { %v590_v1 = vpop.f32.mrf.mxu1 }
 0x298   :  { %v2304_v56 = vadd.f32 %v1571_v25, %v590_v1 }
 0x29a   :  { %v642_v18 = vadd.f32 %v641_v62, %v2304_v56 }
 0x29f   :  { %v593_v31 = vpop.f32.mrf.mxu1 }
 0x2a0   :  { %v2307_v7 = vadd.f32 %v1571_v25, %v593_v31 }
 0x2a2   :  { %v643_v2 = vadd.f32 %v642_v18, %v2307_v7 }
 0x2a7   :  { %v596_v33 = vpop.f32.mrf.mxu1 }
 0x2a8   :  { %v2310_v49 = vadd.f32 %v1571_v25, %v596_v33 }
 0x2aa   :  { %v644_v4 = vadd.f32 %v643_v2, %v2310_v49 }
 0x2af   :  { %v599_v34 = vpop.f32.mrf.mxu1 }
 0x2b0   :  { %v2313_v58 = vadd.f32 %v1571_v25, %v599_v34 }
 0x2b2   :  { %v645_v6 = vadd.f32 %v644_v4, %v2313_v58 }
 0x2b7   :  { %v602_v50 = vpop.f32.mrf.mxu1 }
 0x2b8   :  { %v2316_v26 = vadd.f32 %v1571_v25, %v602_v50 }
 0x2ba   :  { %v646_v60 = vadd.f32 %v645_v6, %v2316_v26 }
 0x2bf   :  { %v605_v3 = vpop.f32.mrf.mxu1 }
 0x2c0   :  { %v2319_v8 = vadd.f32 %v1571_v25, %v605_v3 }
 0x2c2   :  { %v647_v39 = vadd.f32 %v646_v60, %v2319_v8 }
 0x2c7   :  { %v608_v23 = vpop.f32.mrf.mxu1 }
 0x2c8   :  { %v2322_v51 = vadd.f32 %v1571_v25, %v608_v23 }
 0x2ca   :  { %v648_v42 = vadd.f32 %v647_v39, %v2322_v51 }
 0x2cf   :  { %v611_v37 = vpop.f32.mrf.mxu1 }
 0x2d0   :  { %v2325_v14 = vadd.f32 %v1571_v25, %v611_v37 }
 0x2d2   :  { %v649_v35 = vadd.f32 %v648_v42, %v2325_v14 }
 0x2d7   :  { %v614_v30 = vpop.f32.mrf.mxu1 }
 0x2d8   :  { %v2328_v15 = vadd.f32 %v1571_v25, %v614_v30 }
 0x2da   :  { %v650_v17 = vadd.f32 %v649_v35, %v2328_v15 }
 0x2df   :  { %v617_v13 = vpop.f32.mrf.mxu1 }
 0x2e0   :  { %v2331_v16 = vadd.f32 %v1571_v25, %v617_v13 }
 0x2e2   :  { %v651_v40 = vadd.f32 %v650_v17, %v2331_v16 }
 0x2e7   :  { %v620_v63 = vpop.f32.mrf.mxu1 }
 0x2e8   :  { %v2334_v59 = vadd.f32 %v1571_v25, %v620_v63 }
 0x2ea   :  { %v652_v22 = vadd.f32 %v651_v40, %v2334_v59 }
 0x2ef   :  { %v623_v11 = vpop.f32.mrf.mxu1 }
 0x2f0   :  { %v2337_v20 = vadd.f32 %v1571_v25, %v623_v11 }
 0x2f2   :  { %v653_v61 = vadd.f32 %v652_v22, %v2337_v20 }
 0x2f7   :  { %v626_v19 = vpop.f32.mrf.mxu1 }
 0x2f8   :  { %v2340_v24 = vadd.f32 %v1571_v25, %v626_v19 }
 0x2fa   :  { %v654_v53 = vadd.f32 %v653_v61, %v2340_v24 }
 0x2ff   :  { %v629_v21 = vpop.f32.mrf.mxu1 }
 0x300   :  { %v2344_v27 = vadd.f32 %v1571_v25, %v629_v21 }
 0x302   :  { %v655_v29 = vadd.f32 %v654_v53, %v2344_v27 }
 0x304   :  { %v656_v1 = vrot.slane %v655_v29, 4 }
 0x306   :  { %v657_v31 = vadd.f32 %v656_v1, %v655_v29 }
 0x308   :  { %v658_v33 = vrot.slane %v657_v31, 2 }
 0x30a   :  { %v659_v34 = vadd.f32 %v658_v33, %v657_v31 }
 0x30c   :  { %v660_v50 = vrot.slane %v659_v34, 1 }
 0x30e   :  { %v661_v3 = vadd.f32 %v660_v50, %v659_v34 }
 0x310   :  { %v2347_v23 = vmul.f32 0.005, %v661_v3 }
 0x312   :  { %v663_v37 = vsub.f32 %v2274_v38, %v2347_v23  ;;  %v664_v41 = vsub.f32 %v2271_v5, %v2347_v23  ;;  %v665_v25 = vsub.f32 %v2276_v28, %v2347_v23  ;;  %v666_v10 = vsub.f32 %v2280_v0, %v2347_v23 }
 0x313   :  { %v667_v44 = vsub.f32 %v2283_v46, %v2347_v23  ;;  %v668_v13 = vsub.f32 %v2286_v45, %v2347_v23  ;;  %v669_v12 = vsub.f32 %v2289_v52, %v2347_v23  ;;  %v670_v18 = vsub.f32 %v2292_v32, %v2347_v23 }
 0x314   :  { %v688_v43 = vmul.f32 %v663_v37, %v663_v37  ;;  %v689_v30 = vmul.f32 %v664_v41, %v664_v41  ;;  %v690_v9 = vmul.f32 %v665_v25, %v665_v25  ;;  %v691_v48 = vmul.f32 %v666_v10, %v666_v10 }
 0x315   :  { %v692_v62 = vmul.f32 %v667_v44, %v667_v44  ;;  %v693_v2 = vmul.f32 %v668_v13, %v668_v13  ;;  %v671_v6 = vsub.f32 %v2295_v36, %v2347_v23  ;;  %v694_v11 = vmul.f32 %v669_v12, %v669_v12 }
 0x316   :  { %v713_v54 = vadd.f32 %v689_v30, %v688_v43  ;;  %v672_v39 = vsub.f32 %v2298_v47, %v2347_v23  ;;  %v695_v42 = vmul.f32 %v670_v18, %v670_v18  ;;  %v673_v19 = vsub.f32 %v2301_v57, %v2347_v23 }
 0x317   :  { %v696_v17 = vmul.f32 %v671_v6, %v671_v6  ;;  %v674_v22 = vsub.f32 %v2304_v56, %v2347_v23  ;;  %v675_v53 = vsub.f32 %v2307_v7, %v2347_v23  ;;  %v676_v31 = vsub.f32 %v2310_v49, %v2347_v23 }
 0x318   :  { %v714_v55 = vadd.f32 %v713_v54, %v690_v9  ;;  %v697_v61 = vmul.f32 %v672_v39, %v672_v39  ;;  %v698_v29 = vmul.f32 %v673_v19, %v673_v19  ;;  %v677_v50 = vsub.f32 %v2313_v58, %v2347_v23 }
 0x319   :  { %v699_v33 = vmul.f32 %v674_v22, %v674_v22  ;;  %v700_v3 = vmul.f32 %v675_v53, %v675_v53  ;;  %v678_v41 = vsub.f32 %v2316_v26, %v2347_v23  ;;  %v701_v25 = vmul.f32 %v676_v31, %v676_v31 }
 0x31a   :  { %v715_v63 = vadd.f32 %v714_v55, %v691_v48  ;;  %v679_v30 = vsub.f32 %v2319_v8, %v2347_v23  ;;  %v702_v10 = vmul.f32 %v677_v50, %v677_v50  ;;  %v680_v9 = vsub.f32 %v2322_v51, %v2347_v23 }
 0x31b   :  { %v703_v54 = vmul.f32 %v678_v41, %v678_v41  ;;  %v681_v48 = vsub.f32 %v2325_v14, %v2347_v23 }
 0x31c   :  { %v716_v4 = vadd.f32 %v715_v63, %v692_v62  ;;  %v704_v55 = vmul.f32 %v679_v30, %v679_v30  ;;  %v682_v62 = vsub.f32 %v2328_v15, %v2347_v23  ;;  %v705_v63 = vmul.f32 %v680_v9, %v680_v9  ;;  %v927_v30 = vld [vmem:[%s3013_s7 + $0x78] sm:$0xff]  ;;  %v925_v9 = vld [vmem:[%s3013_s7 + $0x68] sm:$0xff] }
 0x31d   :  { %932 = vmatpush.msra.mxu2 %v927_v30 }
 0x31e   :  { %v717_v60 = vadd.f32 %v716_v4, %v693_v2  ;;  %v683_v2 = vsub.f32 %v2331_v16, %v2347_v23  ;;  %v706_v4 = vmul.f32 %v681_v48, %v681_v48  ;;  %v923_v48 = vld [vmem:[%s3013_s7 + $0x58] sm:$0xff] }
 0x320   :  { %v718_v35 = vadd.f32 %v717_v60, %v694_v11  ;;  %v684_v11 = vsub.f32 %v2334_v59, %v2347_v23  ;;  %v707_v60 = vmul.f32 %v682_v62, %v682_v62 }
 0x322   :  { %v719_v40 = vadd.f32 %v718_v35, %v695_v42  ;;  %v685_v42 = vsub.f32 %v2337_v20, %v2347_v23  ;;  %v708_v35 = vmul.f32 %v683_v2, %v683_v2  ;;  %v919_v2 = vld [vmem:[%s3013_s7 + $0x38] sm:$0xff] }
 0x324   :  { %v720_v21 = vadd.f32 %v719_v40, %v696_v17  ;;  %v686_v17 = vsub.f32 %v2340_v24, %v2347_v23  ;;  %v709_v40 = vmul.f32 %v684_v11, %v684_v11 }
 0x326   :  { %v721_v1 = vadd.f32 %v720_v21, %v697_v61  ;;  %v687_v61 = vsub.f32 %v2344_v27, %v2347_v23  ;;  %v710_v21 = vmul.f32 %v685_v42, %v685_v42  ;;  %v916_v42 = vld [vmem:[%s3013_s7 + $0x20] sm:$0xff] }
 0x328   :  { %v722_v34 = vadd.f32 %v721_v1, %v698_v29  ;;  %v711_v29 = vmul.f32 %v686_v17, %v686_v17  ;;  %v712_v31 = vmul.f32 %v687_v61, %v687_v61  ;;  %v915_v17 = vld [vmem:[%s3013_s7 + $0x18] sm:$0xff]  ;;  %v914_v61 = vld [vmem:[%s3013_s7 + $0x10] sm:$0xff] }
 0x32a   :  { %v723_v37 = vadd.f32 %v722_v34, %v699_v33 }
 0x32c   :  { %v724_v43 = vadd.f32 %v723_v37, %v700_v3 }
 0x32e   :  { %v725_v44 = vadd.f32 %v724_v43, %v701_v25 }
 0x330   :  { %v726_v13 = vadd.f32 %v725_v44, %v702_v10  ;;  %v926_v10 = vld [vmem:[%s3013_s7 + $0x70] sm:$0xff] }
 0x331   :  { %933 = vmatpush.msra.mxu2 %v926_v10 }
 0x332   :  { %v727_v12 = vadd.f32 %v726_v13, %v703_v54  ;;  %v924_v13 = vld [vmem:[%s3013_s7 + $0x60] sm:$0xff] }
 0x333   :  { %934 = vmatpush.msra.mxu2 %v925_v9 }
 0x334   :  { %v728_v18 = vadd.f32 %v727_v12, %v704_v55  ;;  %v922_v55 = vld [vmem:[%s3013_s7 + $0x50] sm:$0xff]  ;;  %v921_v12 = vld [vmem:[%s3013_s7 + $0x48] sm:$0xff] }
 0x335   :  { %935 = vmatpush.msra.mxu2 %v924_v13 }
 0x336   :  { %v729_v6 = vadd.f32 %v728_v18, %v705_v63  ;;  %v920_v63 = vld [vmem:[%s3013_s7 + $0x40] sm:$0xff] }
 0x337   :  { %936 = vmatpush.msra.mxu2 %v923_v48 }
 0x338   :  { %v730_v39 = vadd.f32 %v729_v6, %v706_v4  ;;  %v918_v6 = vld [vmem:[%s3013_s7 + $0x30] sm:$0xff] }
 0x339   :  { %937 = vmatpush.msra.mxu2 %v922_v55 }
 0x33a   :  { %v731_v19 = vadd.f32 %v730_v39, %v707_v60  ;;  %v917_v60 = vld [vmem:[%s3013_s7 + $0x28] sm:$0xff] }
 0x33b   :  { %938 = vmatpush.msra.mxu2 %v921_v12 }
 0x33c   :  { %v732_v22 = vadd.f32 %v731_v19, %v708_v35  ;;  %v744_v35 = vld [vmem:[%s3014_s6] sm:$0x1] }
 0x33d   :  { %939 = vmatpush.msra.mxu2 %v920_v63 }
 0x33e   :  { %v733_v53 = vadd.f32 %v732_v22, %v709_v40 }
 0x33f   :  { %940 = vmatpush.msra.mxu2 %v919_v2 }
 0x340   :  { %v734_v1 = vadd.f32 %v733_v53, %v710_v21  ;;  %v757_v21 = vld [vmem:[%s3014_s6 + $0x1] sm:$0x1] }
 0x341   :  { %941 = vmatpush.msra.mxu2 %v918_v6 }
 0x342   :  { %v735_v33 = vadd.f32 %v734_v1, %v711_v29  ;;  %v913_v1 = vld [vmem:[%s3013_s7 + $0x8] sm:$0xff] }
 0x343   :  { %942 = vmatpush.msra.mxu2 %v917_v60 }
 0x344   :  { %v736_v34 = vadd.f32 %v735_v33, %v712_v31  ;;  %v912_v33 = vld [vmem:[%s3013_s7] sm:$0xff] }
 0x345   :  { %943 = vmatpush.msra.mxu2 %v916_v42 }
 0x346   :  { %v737_v50 = vrot.slane %v736_v34, 4 }
 0x347   :  { %944 = vmatpush.msra.mxu2 %v915_v17 }
 0x348   :  { %v738_v3 = vadd.f32 %v737_v50, %v736_v34 }
 0x349   :  { %945 = vmatpush.msra.mxu2 %v914_v61 }
 0x34a   :  { %v739_v37 = vrot.slane %v738_v3, 2 }
 0x34b   :  { %946 = vmatpush.msra.mxu2 %v913_v1 }
 0x34c   :  { %v740_v41 = vadd.f32 %v739_v37, %v738_v3 }
 0x34d   :  { %947 = vmatpush.msra.mxu2 %v912_v33 }
 0x34e   :  { %v741_v25 = vrot.slane %v740_v41, 1 }
 0x350   :  { %v742_v43 = vadd.f32 %v741_v25, %v740_v41 }
 0x352   :  { %v743_v44 = vmul.f32 0.005, %v742_v43 }
 0x354   :  { %v745_v54 = vadd.f32 1e-05, %v743_v44 }
 0x356   :  { %1626 = vrsqrt.f32 %v745_v54  ;;  %vm752_vm5 = vweird.f32 %v745_v54 }
 0x35c   :  { %v1627_v62 = vpop.eup %1626 }
 0x35d   :  { %v747_v18 = vmul.f32 %v1627_v62, %v745_v54  ;;  %vm753_vm4 = vweird.f32 %v1627_v62 }
 0x35e   :  { %vm754_vm6 = vmor %vm752_vm5, %vm753_vm4 }
 0x35f   :  { %v748_v4 = vmul.f32 %v1627_v62, %v747_v18 }
 0x361   :  { %v749_v11 = vmul.f32 0.5, %v748_v4 }
 0x363   :  { %v750_v39 = vsub.f32 1.5, %v749_v11 }
 0x365   :  { %v751_v19 = vmul.f32 %v1627_v62, %v750_v39 }
 0x367   :  { %v755_v40 = vsel %vm754_vm6, %v1627_v62, %v751_v19 }
 0x368   :  { %v756_v22 = vmul.f32 %v755_v40, %v744_v35 }
 0x36a   :  { %v758_v53 = vmul.f32 %v756_v22, %v2347_v23  ;;  %v2448_v29 = vperm.slane %v756_v22, 0 }
 0x36c   :  { %v759_v31 = vsub.f32 %v757_v21, %v758_v53  ;;  %v785_v34 = vmul.f32 %v2448_v29, %v2344_v27  ;;  %v761_v23 = vmul.f32 %v2448_v29, %v2274_v38  ;;  %v762_v3 = vmul.f32 %v2448_v29, %v2271_v5 }
 0x36d   :  { %v769_v27 = vmul.f32 %v2448_v29, %v2295_v36  ;;  %v770_v30 = vmul.f32 %v2448_v29, %v2298_v47  ;;  %v771_v38 = vmul.f32 %v2448_v29, %v2301_v57  ;;  %v772_v5 = vmul.f32 %v2448_v29, %v2304_v56 }
 0x36e   :  { %v2458_v50 = vperm.slane %v759_v31, 0  ;;  %v773_v10 = vmul.f32 %v2448_v29, %v2307_v7  ;;  %v763_v36 = vmul.f32 %v2448_v29, %v2276_v28  ;;  %v774_v7 = vmul.f32 %v2448_v29, %v2310_v49 }
 0x36f   :  { %v775_v28 = vmul.f32 %v2448_v29, %v2313_v58  ;;  %v776_v55 = vmul.f32 %v2448_v29, %v2316_v26  ;;  %v777_v12 = vmul.f32 %v2448_v29, %v2319_v8  ;;  %v778_v62 = vmul.f32 %v2448_v29, %v2322_v51 }
 0x370   :  { %v2465_v37 = vadd.f32 %v2458_v50, %v785_v34  ;;  %v787_v41 = vadd.f32 %v2458_v50, %v761_v23  ;;  %v788_v25 = vadd.f32 %v2458_v50, %v762_v3  ;;  %v2480_v9 = vadd.f32 %v2458_v50, %v769_v27 }
 0x371   :  { %v2483_v54 = vadd.f32 %v2458_v50, %v770_v30  ;;  %v2488_v47 = vadd.f32 %v2458_v50, %v771_v38  ;;  %v2491_v57 = vadd.f32 %v2458_v50, %v772_v5  ;;  %v2494_v56 = vadd.f32 %v2458_v50, %v773_v10 }
 0x372   :  { %v812_v43 = vmul.f32 0.5, %v787_v41  ;;  %v813_v44 = vmul.f32 0.5, %v788_v25  ;;  %v789_v13 = vadd.f32 %v2458_v50, %v763_v36  ;;  %v2500_v48 = vadd.f32 %v2458_v50, %v774_v7 }
 0x373   :  { %v2511_v49 = vadd.f32 %v2458_v50, %v775_v28  ;;  %v2514_v18 = vadd.f32 %v2458_v50, %v776_v55  ;;  %v2517_v4 = vadd.f32 %v2458_v50, %v777_v12  ;;  %v2520_v58 = vadd.f32 %v2458_v50, %v778_v62 }
 0x374   :  { %1628 = vtanh.f32 %v812_v43  ;;  %v814_v26 = vmul.f32 0.5, %v789_v13  ;;  %v779_v8 = vmul.f32 %v2448_v29, %v2325_v14  ;;  %v764_v11 = vmul.f32 %v2448_v29, %v2280_v0 }
 0x375   :  { %1630 = vtanh.f32 %v813_v44  ;;  %v780_v42 = vmul.f32 %v2448_v29, %v2328_v15  ;;  %v781_v14 = vmul.f32 %v2448_v29, %v2331_v16  ;;  %v765_v61 = vmul.f32 %v2448_v29, %v2283_v46 }
 0x376   :  { %v2527_v60 = vadd.f32 %v2458_v50, %v779_v8  ;;  %1632 = vtanh.f32 %v814_v26  ;;  %v790_v39 = vadd.f32 %v2458_v50, %v764_v11  ;;  %v782_v21 = vmul.f32 %v2448_v29, %v2334_v59 }
 0x377   :  { %v2533_v19 = vadd.f32 %v2458_v50, %v780_v42  ;;  %v2538_v0 = vadd.f32 %v2458_v50, %v781_v14  ;;  %v791_v15 = vadd.f32 %v2458_v50, %v765_v61  ;;  %v783_v16 = vmul.f32 %v2448_v29, %v2337_v20 }
 0x378   :  { %v815_v17 = vmul.f32 0.5, %v790_v39  ;;  %v2546_v53 = vadd.f32 %v2458_v50, %v782_v21  ;;  %v784_v31 = vmul.f32 %v2448_v29, %v2340_v24  ;;  %v766_v3 = vmul.f32 %v2448_v29, %v2286_v45 }
 0x379   :  { %v2553_v33 = vadd.f32 %v2458_v50, %v783_v16  ;;  %v816_v59 = vmul.f32 0.5, %v791_v15  ;;  %v767_v27 = vmul.f32 %v2448_v29, %v2289_v52  ;;  %v768_v45 = vmul.f32 %v2448_v29, %v2292_v32 }
 0x37a   :  { %v1629_v63 = vpop.eup %1628  ;;  %1634 = vtanh.f32 %v815_v17  ;;  %v2556_v46 = vadd.f32 %v2458_v50, %v784_v31  ;;  %v792_v20 = vadd.f32 %v2458_v50, %v766_v3  ;;  %v820_v12 = vmul.f32 0.5, %v2480_v9 }
 0x37b   :  { %v862_v2 = vmul.f32 0.5, %v1629_v63  ;;  %v1631_v51 = vpop.eup %1630  ;;  %1636 = vtanh.f32 %v816_v59  ;;  %v793_v30 = vadd.f32 %v2458_v50, %v767_v27  ;;  %v794_v36 = vadd.f32 %v2458_v50, %v768_v45 }
 0x37c   :  { %v863_v35 = vmul.f32 0.5, %v1631_v51  ;;  %v1633_v22 = vpop.eup %1632  ;;  %v817_v25 = vmul.f32 0.5, %v792_v20  ;;  %v821_v32 = vmul.f32 0.5, %v2483_v54  ;;  %v823_v9 = vmul.f32 0.5, %v2491_v57 }
 0x37d   :  { %v887_v6 = vadd.f32 0.5, %v862_v2  ;;  %v864_v1 = vmul.f32 0.5, %v1633_v22  ;;  %v818_v5 = vmul.f32 0.5, %v793_v30  ;;  %v819_v13 = vmul.f32 0.5, %v794_v36 }
 0x37e   :  { %v888_v40 = vadd.f32 0.5, %v863_v35  ;;  %1638 = vtanh.f32 %v817_v25  ;;  %v824_v54 = vmul.f32 0.5, %v2494_v56  ;;  %v826_v57 = vmul.f32 0.5, %v2511_v49 }
 0x37f   :  { %948 = vmatmul.f32.vlgmr.msra.gmra.mxu2 %v887_v6  ;;  %v889_v34 = vadd.f32 0.5, %v864_v1  ;;  %1640 = vtanh.f32 %v818_v5  ;;  %v822_v6 = vmul.f32 0.5, %v2488_v47  ;;  %v825_v47 = vmul.f32 0.5, %v2500_v48 }
 0x380   :  { %v1635_v23 = vpop.eup %1634  ;;  %1642 = vtanh.f32 %v819_v13  ;;  %v827_v56 = vmul.f32 0.5, %v2514_v18  ;;  %v828_v48 = vmul.f32 0.5, %v2517_v4  ;;  %v829_v49 = vmul.f32 0.5, %v2520_v58 }
 0x381   :  { %v865_v41 = vmul.f32 0.5, %v1635_v23  ;;  %v1637_v24 = vpop.eup %1636  ;;  %1644 = vtanh.f32 %v820_v12  ;;  %v830_v18 = vmul.f32 0.5, %v2527_v60  ;;  %v832_v45 = vmul.f32 0.5, %v2538_v0 }
 0x382   :  { %v866_v38 = vmul.f32 0.5, %v1637_v24  ;;  %1646 = vtanh.f32 %v821_v32 }
 0x383   :  { %v890_v43 = vadd.f32 0.5, %v865_v41  ;;  %1648 = vtanh.f32 %v822_v6 }
 0x384   :  { %v891_v10 = vadd.f32 0.5, %v866_v38  ;;  %v1639_v44 = vpop.eup %1638  ;;  %1650 = vtanh.f32 %v823_v9  ;;  %v831_v38 = vmul.f32 0.5, %v2533_v19 }
 0x385   :  { %v867_v7 = vmul.f32 0.5, %v1639_v44  ;;  %v1641_v55 = vpop.eup %1640  ;;  %1652 = vtanh.f32 %v824_v54 }
 0x386   :  { %v868_v52 = vmul.f32 0.5, %v1641_v55  ;;  %v1643_v63 = vpop.eup %1642  ;;  %1654 = vtanh.f32 %v825_v47 }
 0x387   :  { %951 = vmatmul.f32.gmra.mxu2 %v888_v40  ;;  %v892_v28 = vadd.f32 0.5, %v867_v7  ;;  %v869_v2 = vmul.f32 0.5, %v1643_v63  ;;  %v1645_v26 = vpop.eup %1644  ;;  %1656 = vtanh.f32 %v826_v57 }
 0x388   :  { %v893_v62 = vadd.f32 0.5, %v868_v52  ;;  %v870_v50 = vmul.f32 0.5, %v1645_v26  ;;  %v1647_v51 = vpop.eup %1646  ;;  %1658 = vtanh.f32 %v827_v56 }
 0x389   :  { %v894_v29 = vadd.f32 0.5, %v869_v2  ;;  %v871_v11 = vmul.f32 0.5, %v1647_v51  ;;  %v1649_v42 = vpop.eup %1648  ;;  %1660 = vtanh.f32 %v828_v48 }
 0x38a   :  { %v895_v8 = vadd.f32 0.5, %v870_v50  ;;  %v872_v35 = vmul.f32 0.5, %v1649_v42  ;;  %v1651_v17 = vpop.eup %1650  ;;  %1662 = vtanh.f32 %v829_v49 }
 0x38b   :  { %v896_v39 = vadd.f32 0.5, %v871_v11  ;;  %v873_v40 = vmul.f32 0.5, %v1651_v17  ;;  %v1653_v61 = vpop.eup %1652  ;;  %1664 = vtanh.f32 %v830_v18 }
 0x38c   :  { %v897_v14 = vadd.f32 0.5, %v872_v35  ;;  %v874_v21 = vmul.f32 0.5, %v1653_v61  ;;  %v1655_v16 = vpop.eup %1654  ;;  %1666 = vtanh.f32 %v831_v38 }
 0x38d   :  { %v898_v22 = vadd.f32 0.5, %v873_v40  ;;  %v875_v1 = vmul.f32 0.5, %v1655_v16  ;;  %v1657_v59 = vpop.eup %1656  ;;  %1668 = vtanh.f32 %v832_v45  ;;  %v1572_v16 = vld [vmem:[%s3015_s8] ss:$0 sm:$0xff] }
 0x38e   :  { %v899_v15 = vadd.f32 0.5, %v874_v21  ;;  %v1659_v3 = vpop.eup %1658 }
 0x38f   :  { %954 = vmatmul.f32.gmra.mxu2 %v889_v34  ;;  %v900_v31 = vadd.f32 0.5, %v875_v1  ;;  %v876_v34 = vmul.f32 0.5, %v1657_v59  ;;  %v877_v20 = vmul.f32 0.5, %v1659_v3  ;;  %v1661_v25 = vpop.eup %1660 }
 0x390   :  { %v1663_v27 = vpop.eup %1662 }
 0x391   :  { %v901_v23 = vadd.f32 0.5, %v876_v34  ;;  %v902_v41 = vadd.f32 0.5, %v877_v20  ;;  %v879_v30 = vmul.f32 0.5, %v1663_v27 }
 0x393   :  { %v904_v5 = vadd.f32 0.5, %v879_v30 }
 0x397   :  { %957 = vmatmul.f32.gmra.mxu2 %v890_v43  ;;  %v878_v43 = vmul.f32 0.5, %v1661_v25 }
 0x399   :  { %v903_v24 = vadd.f32 0.5, %v878_v43 }
 0x39f   :  { %960 = vmatmul.f32.gmra.mxu2 %v891_v10  ;;  %v1665_v10 = vpop.eup %1664 }
 0x3a0   :  { %v880_v58 = vmul.f32 0.5, %v1665_v10  ;;  %v1667_v7 = vpop.eup %1666 }
 0x3a1   :  { %v881_v60 = vmul.f32 0.5, %v1667_v7  ;;  %v1669_v52 = vpop.eup %1668 }
 0x3a2   :  { %v905_v36 = vadd.f32 0.5, %v880_v58  ;;  %v882_v19 = vmul.f32 0.5, %v1669_v52 }
 0x3a3   :  { %v906_v55 = vadd.f32 0.5, %v881_v60 }
 0x3a4   :  { %v907_v63 = vadd.f32 0.5, %v882_v19 }
 0x3a7   :  { %963 = vmatmul.f32.gmra.mxu2 %v892_v28  ;;  %v833_v28 = vmul.f32 0.5, %v2546_v53 }
 0x3a9   :  { %1670 = vtanh.f32 %v833_v28 }
 0x3af   :  { %966 = vmatmul.f32.gmra.mxu2 %v893_v62  ;;  %v834_v62 = vmul.f32 0.5, %v2553_v33  ;;  %v1671_v2 = vpop.eup %1670 }
 0x3b0   :  { %v883_v0 = vmul.f32 0.5, %v1671_v2 }
 0x3b1   :  { %1672 = vtanh.f32 %v834_v62 }
 0x3b2   :  { %v908_v26 = vadd.f32 0.5, %v883_v0 }
 0x3b7   :  { %969 = vmatmul.f32.gmra.mxu2 %v894_v29  ;;  %v835_v29 = vmul.f32 0.5, %v2556_v46  ;;  %v1673_v50 = vpop.eup %1672 }
 0x3b8   :  { %v884_v53 = vmul.f32 0.5, %v1673_v50 }
 0x3b9   :  { %1674 = vtanh.f32 %v835_v29 }
 0x3ba   :  { %v909_v51 = vadd.f32 0.5, %v884_v53 }
 0x3bf   :  { %972 = vmatmul.f32.gmra.mxu2 %v895_v8  ;;  %v836_v8 = vmul.f32 0.5, %v2465_v37  ;;  %v1675_v11 = vpop.eup %1674 }
 0x3c0   :  { %v885_v33 = vmul.f32 0.5, %v1675_v11 }
 0x3c1   :  { %1676 = vtanh.f32 %v836_v8 }
 0x3c7   :  { %975 = vmatmul.f32.gmra.mxu2 %v896_v39  ;;  %v910_v39 = vadd.f32 0.5, %v885_v33  ;;  %v1677_v42 = vpop.eup %1676 }
 0x3c8   :  { %v886_v35 = vmul.f32 0.5, %v1677_v42 }
 0x3ca   :  { %v911_v46 = vadd.f32 0.5, %v886_v35 }
 0x3cf   :  { %978 = vmatmul.f32.gmra.mxu2 %v897_v14 }
 0x3d7   :  { %981 = vmatmul.f32.gmra.mxu2 %v898_v22 }
 0x3df   :  { %984 = vmatmul.f32.gmra.mxu2 %v899_v15 }
 0x3e7   :  { %987 = vmatmul.f32.gmra.mxu2 %v900_v31 }
 0x3ef   :  { %990 = vmatmul.f32.gmra.mxu2 %v901_v23 }
 0x3f7   :  { %993 = vmatmul.f32.gmra.mxu2 %v902_v41 }
 0x3ff   :  { %996 = vmatmul.f32.gmra.mxu2 %v903_v24 }
 0x402   :  { %v2578_v4 = vpop.f32.mrf.mxu2 }
 0x403   :  { %v2592_v31 = vadd.f32 %v1572_v16, %v2578_v4 }
 0x407   :  { %999 = vmatmul.f32.gmra.mxu2 %v904_v5 }
 0x40a   :  { %v952_v44 = vpop.f32.mrf.mxu2 }
 0x40b   :  { %v2589_v56 = vadd.f32 %v1572_v16, %v952_v44 }
 0x40d   :  { %v1024_v34 = vadd.f32 %v2589_v56, %v2592_v31 }
 0x40f   :  { %1002 = vmatmul.f32.gmra.mxu2 %v905_v36 }
 0x412   :  { %v955_v13 = vpop.f32.mrf.mxu2 }
 0x413   :  { %v2594_v59 = vadd.f32 %v1572_v16, %v955_v13 }
 0x415   :  { %v1025_v23 = vadd.f32 %v1024_v34, %v2594_v59 }
 0x417   :  { %1005 = vmatmul.f32.gmra.mxu2 %v906_v55 }
 0x41a   :  { %v958_v12 = vpop.f32.mrf.mxu2 }
 0x41b   :  { %v2598_v48 = vadd.f32 %v1572_v16, %v958_v12 }
 0x41d   :  { %v1026_v49 = vadd.f32 %v1025_v23, %v2598_v48 }
 0x41f   :  { %1008 = vmatmul.f32.gmra.mxu2 %v907_v63 }
 0x422   :  { %v961_v32 = vpop.f32.mrf.mxu2 }
 0x423   :  { %v2601_v3 = vadd.f32 %v1572_v16, %v961_v32 }
 0x425   :  { %v1027_v25 = vadd.f32 %v1026_v49, %v2601_v3 }
 0x427   :  { %1011 = vmatmul.f32.gmra.mxu2 %v908_v26 }
 0x42a   :  { %v964_v6 = vpop.f32.mrf.mxu2 }
 0x42b   :  { %v2604_v41 = vadd.f32 %v1572_v16, %v964_v6 }
 0x42d   :  { %v1028_v18 = vadd.f32 %v1027_v25, %v2604_v41 }
 0x42f   :  { %1014 = vmatmul.f32.gmra.mxu2 %v909_v51 }
 0x432   :  { %v967_v9 = vpop.f32.mrf.mxu2 }
 0x433   :  { %v2607_v43 = vadd.f32 %v1572_v16, %v967_v9 }
 0x435   :  { %v1029_v27 = vadd.f32 %v1028_v18, %v2607_v43 }
 0x437   :  { %1017 = vmatmul.f32.gmra.mxu2 %v910_v39 }
 0x43a   :  { %v970_v54 = vpop.f32.mrf.mxu2 }
 0x43b   :  { %v2610_v24 = vadd.f32 %v1572_v16, %v970_v54 }
 0x43d   :  { %v1030_v38 = vadd.f32 %v1029_v27, %v2610_v24 }
 0x43f   :  { %1020 = vmatmul.f32.gmra.mxu2 %v911_v46 }
 0x442   :  { %v973_v14 = vpop.f32.mrf.mxu2 }
 0x443   :  { %v2613_v30 = vadd.f32 %v1572_v16, %v973_v14 }
 0x445   :  { %v1031_v10 = vadd.f32 %v1030_v38, %v2613_v30 }
 0x44a   :  { %v976_v17 = vpop.f32.mrf.mxu2 }
 0x44b   :  { %v2616_v5 = vadd.f32 %v1572_v16, %v976_v17 }
 0x44d   :  { %v1032_v44 = vadd.f32 %v1031_v10, %v2616_v5 }
 0x452   :  { %v979_v40 = vpop.f32.mrf.mxu2 }
 0x453   :  { %v2619_v58 = vadd.f32 %v1572_v16, %v979_v40 }
 0x455   :  { %v1033_v36 = vadd.f32 %v1032_v44, %v2619_v58 }
 0x45a   :  { %v982_v47 = vpop.f32.mrf.mxu2 }
 0x45b   :  { %v2622_v45 = vadd.f32 %v1572_v16, %v982_v47 }
 0x45d   :  { %v1034_v13 = vadd.f32 %v1033_v36, %v2622_v45 }
 0x462   :  { %v985_v22 = vpop.f32.mrf.mxu2 }
 0x463   :  { %v2625_v7 = vadd.f32 %v1572_v16, %v985_v22 }
 0x465   :  { %v1035_v55 = vadd.f32 %v1034_v13, %v2625_v7 }
 0x46a   :  { %v988_v61 = vpop.f32.mrf.mxu2 }
 0x46b   :  { %v2628_v28 = vadd.f32 %v1572_v16, %v988_v61 }
 0x46d   :  { %v1036_v19 = vadd.f32 %v1035_v55, %v2628_v28 }
 0x472   :  { %v991_v37 = vpop.f32.mrf.mxu2 }
 0x473   :  { %v2631_v52 = vadd.f32 %v1572_v16, %v991_v37 }
 0x475   :  { %v1037_v62 = vadd.f32 %v1036_v19, %v2631_v52 }
 0x47a   :  { %v994_v21 = vpop.f32.mrf.mxu2 }
 0x47b   :  { %v2634_v12 = vadd.f32 %v1572_v16, %v994_v21 }
 0x47d   :  { %v1038_v0 = vadd.f32 %v1037_v62, %v2634_v12 }
 0x482   :  { %v997_v57 = vpop.f32.mrf.mxu2 }
 0x483   :  { %v2637_v63 = vadd.f32 %v1572_v16, %v997_v57 }
 0x485   :  { %v1039_v29 = vadd.f32 %v1038_v0, %v2637_v63 }
 0x48a   :  { %v1000_v15 = vpop.f32.mrf.mxu2 }
 0x48b   :  { %v2640_v32 = vadd.f32 %v1572_v16, %v1000_v15 }
 0x48d   :  { %v1040_v50 = vadd.f32 %v1039_v29, %v2640_v32 }
 0x492   :  { %v1003_v1 = vpop.f32.mrf.mxu2 }
 0x493   :  { %v2643_v26 = vadd.f32 %v1572_v16, %v1003_v1 }
 0x495   :  { %v1041_v6 = vadd.f32 %v1040_v50, %v2643_v26 }
 0x49a   :  { %v1006_v20 = vpop.f32.mrf.mxu2 }
 0x49b   :  { %v2646_v53 = vadd.f32 %v1572_v16, %v1006_v20 }
 0x49d   :  { %v1042_v11 = vadd.f32 %v1041_v6, %v2646_v53 }
 0x4a2   :  { %v1009_v4 = vpop.f32.mrf.mxu2 }
 0x4a3   :  { %v2649_v8 = vadd.f32 %v1572_v16, %v1009_v4 }
 0x4a5   :  { %v1043_v9 = vadd.f32 %v1042_v11, %v2649_v8 }
 0x4aa   :  { %v1012_v60 = vpop.f32.mrf.mxu2 }
 0x4ab   :  { %v2652_v33 = vadd.f32 %v1572_v16, %v1012_v60 }
 0x4ad   :  { %v1044_v42 = vadd.f32 %v1043_v9, %v2652_v33 }
 0x4b2   :  { %v1015_v2 = vpop.f32.mrf.mxu2 }
 0x4b3   :  { %v2655_v39 = vadd.f32 %v1572_v16, %v1015_v2 }
 0x4b5   :  { %v1045_v54 = vadd.f32 %v1044_v42, %v2655_v39 }
 0x4ba   :  { %v1018_v51 = vpop.f32.mrf.mxu2 }
 0x4bb   :  { %v2658_v35 = vadd.f32 %v1572_v16, %v1018_v51 }
 0x4bd   :  { %v1046_v14 = vadd.f32 %v1045_v54, %v2658_v35 }
 0x4c2   :  { %v1021_v46 = vpop.f32.mrf.mxu2 }
 0x4c3   :  { %v2662_v17 = vadd.f32 %v1572_v16, %v1021_v46 }
 0x4c5   :  { %v1047_v40 = vadd.f32 %v1046_v14, %v2662_v17 }
 0x4c7   :  { %v1048_v47 = vrot.slane %v1047_v40, 4 }
 0x4c9   :  { %v1049_v22 = vadd.f32 %v1048_v47, %v1047_v40 }
 0x4cb   :  { %v1050_v61 = vrot.slane %v1049_v22, 2 }
 0x4cd   :  { %v1051_v37 = vadd.f32 %v1050_v61, %v1049_v22 }
 0x4cf   :  { %v1052_v21 = vrot.slane %v1051_v37, 1 }
 0x4d1   :  { %v1053_v57 = vadd.f32 %v1052_v21, %v1051_v37 }
 0x4d3   :  { %v2665_v15 = vmul.f32 0.005, %v1053_v57 }
 0x4d5   :  { %v1055_v1 = vsub.f32 %v2592_v31, %v2665_v15  ;;  %v1056_v34 = vsub.f32 %v2589_v56, %v2665_v15  ;;  %v1057_v16 = vsub.f32 %v2594_v59, %v2665_v15  ;;  %v1058_v49 = vsub.f32 %v2598_v48, %v2665_v15 }
 0x4d6   :  { %v1059_v25 = vsub.f32 %v2601_v3, %v2665_v15  ;;  %v1060_v4 = vsub.f32 %v2604_v41, %v2665_v15  ;;  %v1061_v44 = vsub.f32 %v2607_v43, %v2665_v15  ;;  %v1062_v13 = vsub.f32 %v2610_v24, %v2665_v15 }
 0x4d7   :  { %v1080_v23 = vmul.f32 %v1055_v1, %v1055_v1  ;;  %v1081_v20 = vmul.f32 %v1056_v34, %v1056_v34  ;;  %v1082_v18 = vmul.f32 %v1057_v16, %v1057_v16  ;;  %v1083_v38 = vmul.f32 %v1058_v49, %v1058_v49 }
 0x4d8   :  { %v1084_v36 = vmul.f32 %v1059_v25, %v1059_v25  ;;  %v1085_v55 = vmul.f32 %v1060_v4, %v1060_v4  ;;  %v1063_v62 = vsub.f32 %v2613_v30, %v2665_v15  ;;  %v1086_v2 = vmul.f32 %v1061_v44, %v1061_v44 }
 0x4d9   :  { %v1105_v27 = vadd.f32 %v1081_v20, %v1080_v23  ;;  %v1064_v29 = vsub.f32 %v2616_v5, %v2665_v15  ;;  %v1087_v50 = vmul.f32 %v1062_v13, %v1062_v13  ;;  %v1065_v51 = vsub.f32 %v2619_v58, %v2665_v15 }
 0x4da   :  { %v1088_v11 = vmul.f32 %v1063_v62, %v1063_v62  ;;  %v1066_v42 = vsub.f32 %v2622_v45, %v2665_v15  ;;  %v1067_v14 = vsub.f32 %v2625_v7, %v2665_v15  ;;  %v1068_v22 = vsub.f32 %v2628_v28, %v2665_v15 }
 0x4db   :  { %v1106_v10 = vadd.f32 %v1105_v27, %v1082_v18  ;;  %v1089_v54 = vmul.f32 %v1064_v29, %v1064_v29  ;;  %v1090_v40 = vmul.f32 %v1065_v51, %v1065_v51  ;;  %v1069_v21 = vsub.f32 %v2631_v52, %v2665_v15 }
 0x4dc   :  { %v1091_v61 = vmul.f32 %v1066_v42, %v1066_v42  ;;  %v1092_v57 = vmul.f32 %v1067_v14, %v1067_v14  ;;  %v1070_v34 = vsub.f32 %v2634_v12, %v2665_v15  ;;  %v1093_v16 = vmul.f32 %v1068_v22, %v1068_v22 }
 0x4dd   :  { %v1107_v60 = vadd.f32 %v1106_v10, %v1083_v38  ;;  %v1071_v20 = vsub.f32 %v2637_v63, %v2665_v15  ;;  %v1094_v49 = vmul.f32 %v1069_v21, %v1069_v21  ;;  %v1072_v18 = vsub.f32 %v2640_v32, %v2665_v15 }
 0x4de   :  { %v1095_v27 = vmul.f32 %v1070_v34, %v1070_v34  ;;  %v1073_v38 = vsub.f32 %v2643_v26, %v2665_v15 }
 0x4df   :  { %v1108_v19 = vadd.f32 %v1107_v60, %v1084_v36  ;;  %v1096_v10 = vmul.f32 %v1071_v20, %v1071_v20  ;;  %v1074_v36 = vsub.f32 %v2646_v53, %v2665_v15  ;;  %v1097_v60 = vmul.f32 %v1072_v18, %v1072_v18  ;;  %v1319_v20 = vld [vmem:[%s3016_s10 + $0x78] sm:$0xff]  ;;  %v1317_v18 = vld [vmem:[%s3016_s10 + $0x68] sm:$0xff] }
 0x4e0   :  { %1324 = vmatpush.msra.mxu3 %v1319_v20 }
 0x4e1   :  { %v1109_v0 = vadd.f32 %v1108_v19, %v1085_v55  ;;  %v1075_v55 = vsub.f32 %v2649_v8, %v2665_v15  ;;  %v1098_v19 = vmul.f32 %v1073_v38, %v1073_v38  ;;  %v1315_v38 = vld [vmem:[%s3016_s10 + $0x58] sm:$0xff] }
 0x4e3   :  { %v1110_v6 = vadd.f32 %v1109_v0, %v1086_v2  ;;  %v1076_v2 = vsub.f32 %v2652_v33, %v2665_v15  ;;  %v1099_v0 = vmul.f32 %v1074_v36, %v1074_v36 }
 0x4e5   :  { %v1111_v9 = vadd.f32 %v1110_v6, %v1087_v50  ;;  %v1077_v50 = vsub.f32 %v2655_v39, %v2665_v15  ;;  %v1100_v6 = vmul.f32 %v1075_v55, %v1075_v55  ;;  %v1311_v55 = vld [vmem:[%s3016_s10 + $0x38] sm:$0xff] }
 0x4e7   :  { %v1112_v46 = vadd.f32 %v1111_v9, %v1088_v11  ;;  %v1078_v11 = vsub.f32 %v2658_v35, %v2665_v15  ;;  %v1101_v9 = vmul.f32 %v1076_v2, %v1076_v2 }
 0x4e9   :  { %v1113_v47 = vadd.f32 %v1112_v46, %v1089_v54  ;;  %v1079_v54 = vsub.f32 %v2662_v17, %v2665_v15  ;;  %v1102_v46 = vmul.f32 %v1077_v50, %v1077_v50  ;;  %v1308_v50 = vld [vmem:[%s3016_s10 + $0x20] sm:$0xff] }
 0x4eb   :  { %v1114_v37 = vadd.f32 %v1113_v47, %v1090_v40  ;;  %v1103_v40 = vmul.f32 %v1078_v11, %v1078_v11  ;;  %v1104_v22 = vmul.f32 %v1079_v54, %v1079_v54  ;;  %v1307_v11 = vld [vmem:[%s3016_s10 + $0x18] sm:$0xff]  ;;  %v1306_v54 = vld [vmem:[%s3016_s10 + $0x10] sm:$0xff] }
 0x4ed   :  { %v1115_v1 = vadd.f32 %v1114_v37, %v1091_v61 }
 0x4ef   :  { %v1116_v23 = vadd.f32 %v1115_v1, %v1092_v57 }
 0x4f1   :  { %v1117_v25 = vadd.f32 %v1116_v23, %v1093_v16 }
 0x4f3   :  { %v1118_v4 = vadd.f32 %v1117_v25, %v1094_v49  ;;  %v1318_v49 = vld [vmem:[%s3016_s10 + $0x70] sm:$0xff] }
 0x4f4   :  { %1325 = vmatpush.msra.mxu3 %v1318_v49 }
 0x4f5   :  { %v1119_v44 = vadd.f32 %v1118_v4, %v1095_v27  ;;  %v1316_v4 = vld [vmem:[%s3016_s10 + $0x60] sm:$0xff] }
 0x4f6   :  { %1326 = vmatpush.msra.mxu3 %v1317_v18 }
 0x4f7   :  { %v1120_v13 = vadd.f32 %v1119_v44, %v1096_v10  ;;  %v1314_v10 = vld [vmem:[%s3016_s10 + $0x50] sm:$0xff]  ;;  %v1313_v44 = vld [vmem:[%s3016_s10 + $0x48] sm:$0xff] }
 0x4f8   :  { %1327 = vmatpush.msra.mxu3 %v1316_v4 }
 0x4f9   :  { %v1121_v62 = vadd.f32 %v1120_v13, %v1097_v60  ;;  %v1312_v60 = vld [vmem:[%s3016_s10 + $0x40] sm:$0xff] }
 0x4fa   :  { %1328 = vmatpush.msra.mxu3 %v1315_v38 }
 0x4fb   :  { %v1122_v29 = vadd.f32 %v1121_v62, %v1098_v19  ;;  %v1310_v62 = vld [vmem:[%s3016_s10 + $0x30] sm:$0xff] }
 0x4fc   :  { %1329 = vmatpush.msra.mxu3 %v1314_v10 }
 0x4fd   :  { %v1123_v51 = vadd.f32 %v1122_v29, %v1099_v0  ;;  %v1309_v0 = vld [vmem:[%s3016_s10 + $0x28] sm:$0xff] }
 0x4fe   :  { %1330 = vmatpush.msra.mxu3 %v1313_v44 }
 0x4ff   :  { %v1124_v42 = vadd.f32 %v1123_v51, %v1100_v6  ;;  %v1136_v6 = vld [vmem:[%s3017_s9] sm:$0x1] }
 0x500   :  { %1331 = vmatpush.msra.mxu3 %v1312_v60 }
 0x501   :  { %v1125_v14 = vadd.f32 %v1124_v42, %v1101_v9 }
 0x502   :  { %1332 = vmatpush.msra.mxu3 %v1311_v55 }
 0x503   :  { %v1126_v47 = vadd.f32 %v1125_v14, %v1102_v46  ;;  %v1149_v46 = vld [vmem:[%s3017_s9 + $0x1] sm:$0x1] }
 0x504   :  { %1333 = vmatpush.msra.mxu3 %v1310_v62 }
 0x505   :  { %v1127_v61 = vadd.f32 %v1126_v47, %v1103_v40  ;;  %v1305_v47 = vld [vmem:[%s3016_s10 + $0x8] sm:$0xff] }
 0x506   :  { %1334 = vmatpush.msra.mxu3 %v1309_v0 }
 0x507   :  { %v1128_v37 = vadd.f32 %v1127_v61, %v1104_v22  ;;  %v1304_v61 = vld [vmem:[%s3016_s10] sm:$0xff] }
 0x508   :  { %1335 = vmatpush.msra.mxu3 %v1308_v50 }
 0x509   :  { %v1129_v21 = vrot.slane %v1128_v37, 4 }
 0x50a   :  { %1336 = vmatpush.msra.mxu3 %v1307_v11 }
 0x50b   :  { %v1130_v57 = vadd.f32 %v1129_v21, %v1128_v37 }
 0x50c   :  { %1337 = vmatpush.msra.mxu3 %v1306_v54 }
 0x50d   :  { %v1131_v1 = vrot.slane %v1130_v57, 2 }
 0x50e   :  { %1338 = vmatpush.msra.mxu3 %v1305_v47 }
 0x50f   :  { %v1132_v34 = vadd.f32 %v1131_v1, %v1130_v57 }
 0x510   :  { %1339 = vmatpush.msra.mxu3 %v1304_v61 }
 0x511   :  { %v1133_v16 = vrot.slane %v1132_v34, 1 }
 0x513   :  { %v1134_v23 = vadd.f32 %v1133_v16, %v1132_v34 }
 0x515   :  { %v1135_v25 = vmul.f32 0.005, %v1134_v23 }
 0x517   :  { %v1137_v27 = vadd.f32 1e-05, %v1135_v25 }
 0x519   :  { %1678 = vrsqrt.f32 %v1137_v27  ;;  %vm1144_vm8 = vweird.f32 %v1137_v27 }
 0x51f   :  { %v1679_v36 = vpop.eup %1678 }
 0x520   :  { %v1139_v13 = vmul.f32 %v1679_v36, %v1137_v27  ;;  %vm1145_vm7 = vweird.f32 %v1679_v36 }
 0x521   :  { %vm1146_vm9 = vmor %vm1144_vm8, %vm1145_vm7 }
 0x522   :  { %v1140_v19 = vmul.f32 %v1679_v36, %v1139_v13 }
 0x524   :  { %v1141_v2 = vmul.f32 0.5, %v1140_v19 }
 0x526   :  { %v1142_v29 = vsub.f32 1.5, %v1141_v2 }
 0x528   :  { %v1143_v51 = vmul.f32 %v1679_v36, %v1142_v29 }
 0x52a   :  { %v1147_v9 = vsel %vm1146_vm9, %v1679_v36, %v1143_v51 }
 0x52b   :  { %v1148_v42 = vmul.f32 %v1147_v9, %v1136_v6 }
 0x52d   :  { %v1150_v14 = vmul.f32 %v1148_v42, %v2665_v15  ;;  %v2766_v40 = vperm.slane %v1148_v42, 0 }
 0x52f   :  { %v1151_v22 = vsub.f32 %v1149_v46, %v1150_v14  ;;  %v1177_v37 = vmul.f32 %v2766_v40, %v2662_v17  ;;  %v1153_v15 = vmul.f32 %v2766_v40, %v2592_v31  ;;  %v1154_v57 = vmul.f32 %v2766_v40, %v2589_v56 }
 0x530   :  { %v1161_v17 = vmul.f32 %v2766_v40, %v2613_v30  ;;  %v1162_v20 = vmul.f32 %v2766_v40, %v2616_v5  ;;  %v1163_v31 = vmul.f32 %v2766_v40, %v2619_v58  ;;  %v1164_v56 = vmul.f32 %v2766_v40, %v2622_v45 }
 0x531   :  { %v2776_v21 = vperm.slane %v1151_v22, 0  ;;  %v1165_v49 = vmul.f32 %v2766_v40, %v2625_v7  ;;  %v1155_v30 = vmul.f32 %v2766_v40, %v2594_v59  ;;  %v1166_v7 = vmul.f32 %v2766_v40, %v2628_v28 }
 0x532   :  { %v1167_v59 = vmul.f32 %v2766_v40, %v2631_v52  ;;  %v1168_v10 = vmul.f32 %v2766_v40, %v2634_v12  ;;  %v1169_v44 = vmul.f32 %v2766_v40, %v2637_v63  ;;  %v1170_v36 = vmul.f32 %v2766_v40, %v2640_v32 }
 0x533   :  { %v2783_v1 = vadd.f32 %v2776_v21, %v1177_v37  ;;  %v1179_v34 = vadd.f32 %v2776_v21, %v1153_v15  ;;  %v1180_v16 = vadd.f32 %v2776_v21, %v1154_v57  ;;  %v2798_v18 = vadd.f32 %v2776_v21, %v1161_v17 }
 0x534   :  { %v2801_v27 = vadd.f32 %v2776_v21, %v1162_v20  ;;  %v2806_v5 = vadd.f32 %v2776_v21, %v1163_v31  ;;  %v2809_v58 = vadd.f32 %v2776_v21, %v1164_v56  ;;  %v2812_v45 = vadd.f32 %v2776_v21, %v1165_v49 }
 0x535   :  { %v1204_v23 = vmul.f32 0.5, %v1179_v34  ;;  %v1205_v25 = vmul.f32 0.5, %v1180_v16  ;;  %v1181_v4 = vadd.f32 %v2776_v21, %v1155_v30  ;;  %v2818_v38 = vadd.f32 %v2776_v21, %v1166_v7 }
 0x536   :  { %v2829_v28 = vadd.f32 %v2776_v21, %v1167_v59  ;;  %v2832_v13 = vadd.f32 %v2776_v21, %v1168_v10  ;;  %v2835_v19 = vadd.f32 %v2776_v21, %v1169_v44  ;;  %v2838_v52 = vadd.f32 %v2776_v21, %v1170_v36 }
 0x537   :  { %1680 = vtanh.f32 %v1204_v23  ;;  %v1206_v12 = vmul.f32 0.5, %v1181_v4  ;;  %v1171_v63 = vmul.f32 %v2766_v40, %v2643_v26  ;;  %v1156_v2 = vmul.f32 %v2766_v40, %v2598_v48 }
 0x538   :  { %1682 = vtanh.f32 %v1205_v25  ;;  %v1172_v50 = vmul.f32 %v2766_v40, %v2646_v53  ;;  %v1173_v26 = vmul.f32 %v2766_v40, %v2649_v8  ;;  %v1157_v54 = vmul.f32 %v2766_v40, %v2601_v3 }
 0x539   :  { %v2845_v0 = vadd.f32 %v2776_v21, %v1171_v63  ;;  %1684 = vtanh.f32 %v1206_v12  ;;  %v1182_v29 = vadd.f32 %v2776_v21, %v1156_v2  ;;  %v1174_v46 = vmul.f32 %v2766_v40, %v2652_v33 }
 0x53a   :  { %v2851_v51 = vadd.f32 %v2776_v21, %v1172_v50  ;;  %v2856_v48 = vadd.f32 %v2776_v21, %v1173_v26  ;;  %v1183_v53 = vadd.f32 %v2776_v21, %v1157_v54  ;;  %v1175_v8 = vmul.f32 %v2766_v40, %v2655_v39 }
 0x53b   :  { %v1207_v11 = vmul.f32 0.5, %v1182_v29  ;;  %v2864_v14 = vadd.f32 %v2776_v21, %v1174_v46  ;;  %v1176_v22 = vmul.f32 %v2766_v40, %v2658_v35  ;;  %v1158_v57 = vmul.f32 %v2766_v40, %v2604_v41 }
 0x53c   :  { %v2871_v61 = vadd.f32 %v2776_v21, %v1175_v8  ;;  %v1208_v33 = vmul.f32 0.5, %v1183_v53  ;;  %v1159_v17 = vmul.f32 %v2766_v40, %v2607_v43  ;;  %v1160_v41 = vmul.f32 %v2766_v40, %v2610_v24 }
 0x53d   :  { %v1681_v60 = vpop.eup %1680  ;;  %1686 = vtanh.f32 %v1207_v11  ;;  %v2874_v3 = vadd.f32 %v2776_v21, %v1176_v22  ;;  %v1184_v39 = vadd.f32 %v2776_v21, %v1158_v57  ;;  %v1212_v44 = vmul.f32 0.5, %v2798_v18 }
 0x53e   :  { %v1254_v55 = vmul.f32 0.5, %v1681_v60  ;;  %v1683_v32 = vpop.eup %1682  ;;  %1688 = vtanh.f32 %v1208_v33  ;;  %v1185_v20 = vadd.f32 %v2776_v21, %v1159_v17  ;;  %v1186_v30 = vadd.f32 %v2776_v21, %v1160_v41 }
 0x53f   :  { %v1255_v6 = vmul.f32 0.5, %v1683_v32  ;;  %v1685_v42 = vpop.eup %1684  ;;  %v1209_v16 = vmul.f32 0.5, %v1184_v39  ;;  %v1213_v24 = vmul.f32 0.5, %v2801_v27  ;;  %v1215_v18 = vmul.f32 0.5, %v2809_v58 }
 0x540   :  { %v1279_v62 = vadd.f32 0.5, %v1254_v55  ;;  %v1256_v47 = vmul.f32 0.5, %v1685_v42  ;;  %v1210_v56 = vmul.f32 0.5, %v1185_v20  ;;  %v1211_v4 = vmul.f32 0.5, %v1186_v30 }
 0x541   :  { %v1280_v9 = vadd.f32 0.5, %v1255_v6  ;;  %1690 = vtanh.f32 %v1209_v16  ;;  %v1216_v27 = vmul.f32 0.5, %v2812_v45  ;;  %v1218_v58 = vmul.f32 0.5, %v2829_v28 }
 0x542   :  { %1340 = vmatmul.f32.vlgmr.msra.gmra.mxu3 %v1279_v62  ;;  %v1281_v37 = vadd.f32 0.5, %v1256_v47  ;;  %1692 = vtanh.f32 %v1210_v56  ;;  %v1214_v62 = vmul.f32 0.5, %v2806_v5  ;;  %v1217_v5 = vmul.f32 0.5, %v2818_v38 }
 0x543   :  { %v1687_v15 = vpop.eup %1686  ;;  %1694 = vtanh.f32 %v1211_v4  ;;  %v1219_v45 = vmul.f32 0.5, %v2832_v13  ;;  %v1220_v38 = vmul.f32 0.5, %v2835_v19  ;;  %v1221_v28 = vmul.f32 0.5, %v2838_v52  ;;  %v2899_v19 = vld [vmem:[%s3018_s11] ss:$0 sm:$0xff] }
 0x544   :  { %v1257_v34 = vmul.f32 0.5, %v1687_v15  ;;  %v1689_v35 = vpop.eup %1688  ;;  %1696 = vtanh.f32 %v1212_v44  ;;  %v1222_v13 = vmul.f32 0.5, %v2845_v0  ;;  %v1223_v56 = vmul.f32 0.5, %v2851_v51 }
 0x545   :  { %v1258_v31 = vmul.f32 0.5, %v1689_v35  ;;  %1698 = vtanh.f32 %v1213_v24  ;;  %v1224_v4 = vmul.f32 0.5, %v2856_v48 }
 0x546   :  { %v1282_v23 = vadd.f32 0.5, %v1257_v34  ;;  %1700 = vtanh.f32 %v1214_v62 }
 0x547   :  { %v1283_v49 = vadd.f32 0.5, %v1258_v31  ;;  %v1691_v25 = vpop.eup %1690  ;;  %1702 = vtanh.f32 %v1215_v18 }
 0x548   :  { %v1259_v7 = vmul.f32 0.5, %v1691_v25  ;;  %v1693_v10 = vpop.eup %1692  ;;  %1704 = vtanh.f32 %v1216_v27 }
 0x549   :  { %v1260_v43 = vmul.f32 0.5, %v1693_v10  ;;  %v1695_v60 = vpop.eup %1694  ;;  %1706 = vtanh.f32 %v1217_v5 }
 0x54a   :  { %1343 = vmatmul.f32.gmra.mxu3 %v1280_v9  ;;  %v1284_v59 = vadd.f32 0.5, %v1259_v7  ;;  %v1261_v55 = vmul.f32 0.5, %v1695_v60  ;;  %v1697_v12 = vpop.eup %1696  ;;  %1708 = vtanh.f32 %v1218_v58 }
 0x54b   :  { %v1285_v36 = vadd.f32 0.5, %v1260_v43  ;;  %v1262_v21 = vmul.f32 0.5, %v1697_v12  ;;  %v1699_v32 = vpop.eup %1698  ;;  %1710 = vtanh.f32 %v1219_v45 }
 0x54c   :  { %v1286_v40 = vadd.f32 0.5, %v1261_v55  ;;  %v1263_v2 = vmul.f32 0.5, %v1699_v32  ;;  %v1701_v50 = vpop.eup %1700  ;;  %1712 = vtanh.f32 %v1220_v38  ;;  %v1228_v38 = vmul.f32 0.5, %v2783_v1 }
 0x54d   :  { %v1287_v63 = vadd.f32 0.5, %v1262_v21  ;;  %v1264_v6 = vmul.f32 0.5, %v1701_v50  ;;  %v1703_v11 = vpop.eup %1702  ;;  %1714 = vtanh.f32 %v1221_v28  ;;  %v1226_v50 = vmul.f32 0.5, %v2871_v61 }
 0x54e   :  { %v1288_v29 = vadd.f32 0.5, %v1263_v2  ;;  %v1265_v9 = vmul.f32 0.5, %v1703_v11  ;;  %v1705_v54 = vpop.eup %1704  ;;  %1716 = vtanh.f32 %v1222_v13 }
 0x54f   :  { %v1289_v26 = vadd.f32 0.5, %v1264_v6  ;;  %v1266_v46 = vmul.f32 0.5, %v1705_v54  ;;  %v1707_v8 = vpop.eup %1706 }
 0x550   :  { %v1290_v42 = vadd.f32 0.5, %v1265_v9  ;;  %v1267_v47 = vmul.f32 0.5, %v1707_v8  ;;  %v1709_v33 = vpop.eup %1708 }
 0x551   :  { %v1291_v53 = vadd.f32 0.5, %v1266_v46  ;;  %v1711_v57 = vpop.eup %1710  ;;  %v1227_v46 = vmul.f32 0.5, %v2874_v3 }
 0x552   :  { %1346 = vmatmul.f32.gmra.mxu3 %v1281_v37  ;;  %v1292_v22 = vadd.f32 0.5, %v1267_v47  ;;  %v1268_v37 = vmul.f32 0.5, %v1709_v33  ;;  %v1269_v39 = vmul.f32 0.5, %v1711_v57  ;;  %v1713_v16 = vpop.eup %1712 }
 0x553   :  { %v1715_v17 = vpop.eup %1714 }
 0x554   :  { %v1293_v15 = vadd.f32 0.5, %v1268_v37  ;;  %v1294_v34 = vadd.f32 0.5, %v1269_v39  ;;  %v1271_v20 = vmul.f32 0.5, %v1715_v17  ;;  %v1717_v41 = vpop.eup %1716 }
 0x555   :  { %v1272_v0 = vmul.f32 0.5, %v1717_v41 }
 0x556   :  { %v1296_v25 = vadd.f32 0.5, %v1271_v20 }
 0x557   :  { %v1297_v43 = vadd.f32 0.5, %v1272_v0 }
 0x55a   :  { %1349 = vmatmul.f32.gmra.mxu3 %v1282_v23  ;;  %v1270_v23 = vmul.f32 0.5, %v1713_v16 }
 0x55c   :  { %v1295_v35 = vadd.f32 0.5, %v1270_v23 }
 0x562   :  { %1352 = vmatmul.f32.gmra.mxu3 %v1283_v49 }
 0x56a   :  { %1355 = vmatmul.f32.gmra.mxu3 %v1284_v59 }
 0x572   :  { %1358 = vmatmul.f32.gmra.mxu3 %v1285_v36 }
 0x57a   :  { %1361 = vmatmul.f32.gmra.mxu3 %v1286_v40  ;;  %v1225_v40 = vmul.f32 0.5, %v2864_v14 }
 0x582   :  { %1364 = vmatmul.f32.gmra.mxu3 %v1287_v63 }
 0x58a   :  { %1367 = vmatmul.f32.gmra.mxu3 %v1288_v29 }
 0x592   :  { %1370 = vmatmul.f32.gmra.mxu3 %v1289_v26 }
 0x59a   :  { %1373 = vmatmul.f32.gmra.mxu3 %v1290_v42 }
 0x5a2   :  { %1376 = vmatmul.f32.gmra.mxu3 %v1291_v53 }
 0x5aa   :  { %1379 = vmatmul.f32.gmra.mxu3 %v1292_v22 }
 0x5b2   :  { %1382 = vmatmul.f32.gmra.mxu3 %v1293_v15 }
 0x5ba   :  { %1385 = vmatmul.f32.gmra.mxu3 %v1294_v34 }
 0x5c2   :  { %1388 = vmatmul.f32.gmra.mxu3 %v1295_v35 }
 0x5c5   :  { %v1341_v31 = vpop.f32.mrf.mxu3 }
 0x5c6   :  { %v1342_v52 = vadd.f32 %v2899_v19, %v1341_v31 }
 0x5c8   :  { %v1416_v49 = vmul.f32 0.5, %v1342_v52 }
 0x5ca   :  { %1718 = vtanh.f32 %v1416_v49  ;;  %1391 = vmatmul.f32.gmra.mxu3 %v1296_v25 }
 0x5cb   :  { %1720 = vtanh.f32 %v1223_v56 }
 0x5cd   :  { %v1344_v30 = vpop.f32.mrf.mxu3 }
 0x5ce   :  { %v1345_v7 = vadd.f32 %v2899_v19, %v1344_v30 }
 0x5d0   :  { %v1719_v59 = vpop.eup %1718  ;;  %v1417_v10 = vmul.f32 0.5, %v1345_v7 }
 0x5d1   :  { %v1721_v44 = vpop.eup %1720  ;;  %v1466_v36 = vmul.f32 0.5, %v1719_v59 }
 0x5d2   :  { %1722 = vtanh.f32 %v1417_v10  ;;  %1394 = vmatmul.f32.gmra.mxu3 %v1297_v43  ;;  %v1273_v60 = vmul.f32 0.5, %v1721_v44 }
 0x5d3   :  { %v1491_v51 = vadd.f32 0.5, %v1466_v36  ;;  %1724 = vtanh.f32 %v1224_v4 }
 0x5d4   :  { %v1298_v21 = vadd.f32 0.5, %v1273_v60 }
 0x5d5   :  { %1516 = vst [vmem:[%s3019_s12] sm:$0xff] %v1491_v51  ;;  %v1347_v55 = vpop.f32.mrf.mxu3 }
 0x5d6   :  { %v1348_v24 = vadd.f32 %v2899_v19, %v1347_v55 }
 0x5d8   :  { %v1723_v48 = vpop.eup %1722  ;;  %v1418_v12 = vmul.f32 0.5, %v1348_v24 }
 0x5d9   :  { %v1725_v62 = vpop.eup %1724  ;;  %v1467_v63 = vmul.f32 0.5, %v1723_v48 }
 0x5da   :  { %1726 = vtanh.f32 %v1418_v12  ;;  %1397 = vmatmul.f32.gmra.mxu3 %v1298_v21  ;;  %v1274_v2 = vmul.f32 0.5, %v1725_v62 }
 0x5db   :  { %v1492_v32 = vadd.f32 0.5, %v1467_v63  ;;  %1728 = vtanh.f32 %v1225_v40 }
 0x5dc   :  { %v1299_v27 = vadd.f32 0.5, %v1274_v2 }
 0x5dd   :  { %1517 = vst [vmem:[%s3019_s12 + $0x8] sm:$0xff] %v1492_v32  ;;  %v1350_v18 = vpop.f32.mrf.mxu3 }
 0x5de   :  { %v1351_v29 = vadd.f32 %v2899_v19, %v1350_v18 }
 0x5e0   :  { %v1727_v14 = vpop.eup %1726  ;;  %v1419_v6 = vmul.f32 0.5, %v1351_v29 }
 0x5e1   :  { %v1729_v26 = vpop.eup %1728  ;;  %v1468_v11 = vmul.f32 0.5, %v1727_v14 }
 0x5e2   :  { %1730 = vtanh.f32 %v1419_v6  ;;  %1400 = vmatmul.f32.gmra.mxu3 %v1299_v27  ;;  %v1275_v5 = vmul.f32 0.5, %v1729_v26 }
 0x5e3   :  { %v1493_v9 = vadd.f32 0.5, %v1468_v11  ;;  %1732 = vtanh.f32 %v1226_v50 }
 0x5e4   :  { %v1300_v53 = vadd.f32 0.5, %v1275_v5 }
 0x5e5   :  { %1518 = vst [vmem:[%s3019_s12 + $0x10] sm:$0xff] %v1493_v9  ;;  %v1353_v42 = vpop.f32.mrf.mxu3 }
 0x5e6   :  { %v1354_v54 = vadd.f32 %v2899_v19, %v1353_v42 }
 0x5e8   :  { %v1731_v61 = vpop.eup %1730  ;;  %v1420_v58 = vmul.f32 0.5, %v1354_v54 }
 0x5e9   :  { %v1733_v8 = vpop.eup %1732  ;;  %v1469_v47 = vmul.f32 0.5, %v1731_v61 }
 0x5ea   :  { %1734 = vtanh.f32 %v1420_v58  ;;  %1403 = vmatmul.f32.gmra.mxu3 %v1300_v53  ;;  %v1276_v22 = vmul.f32 0.5, %v1733_v8 }
 0x5eb   :  { %v1494_v45 = vadd.f32 0.5, %v1469_v47  ;;  %1736 = vtanh.f32 %v1227_v46 }
 0x5ec   :  { %v1301_v57 = vadd.f32 0.5, %v1276_v22 }
 0x5ed   :  { %1519 = vst [vmem:[%s3019_s12 + $0x18] sm:$0xff] %v1494_v45  ;;  %v1356_v33 = vpop.f32.mrf.mxu3 }
 0x5ee   :  { %v1357_v37 = vadd.f32 %v2899_v19, %v1356_v33 }
 0x5f0   :  { %v1735_v3 = vpop.eup %1734  ;;  %v1421_v15 = vmul.f32 0.5, %v1357_v37 }
 0x5f1   :  { %v1737_v39 = vpop.eup %1736  ;;  %v1470_v28 = vmul.f32 0.5, %v1735_v3 }
 0x5f2   :  { %1738 = vtanh.f32 %v1421_v15  ;;  %1406 = vmatmul.f32.gmra.mxu3 %v1301_v57  ;;  %v1277_v16 = vmul.f32 0.5, %v1737_v39 }
 0x5f3   :  { %v1495_v34 = vadd.f32 0.5, %v1470_v28  ;;  %1740 = vtanh.f32 %v1228_v38 }
 0x5f4   :  { %v1302_v1 = vadd.f32 0.5, %v1277_v16 }
 0x5f5   :  { %1520 = vst [vmem:[%s3019_s12 + $0x20] sm:$0xff] %v1495_v34  ;;  %v1359_v23 = vpop.f32.mrf.mxu3 }
 0x5f6   :  { %v1360_v13 = vadd.f32 %v2899_v19, %v1359_v23 }
 0x5f8   :  { %v1739_v35 = vpop.eup %1738  ;;  %v1422_v17 = vmul.f32 0.5, %v1360_v13 }
 0x5f9   :  { %v1741_v20 = vpop.eup %1740  ;;  %v1471_v31 = vmul.f32 0.5, %v1739_v35 }
 0x5fa   :  { %1742 = vtanh.f32 %v1422_v17  ;;  %1409 = vmatmul.f32.gmra.mxu3 %v1302_v1  ;;  %v1278_v56 = vmul.f32 0.5, %v1741_v20 }
 0x5fb   :  { %v1496_v52 = vadd.f32 0.5, %v1471_v31 }
 0x5fc   :  { %v1303_v30 = vadd.f32 0.5, %v1278_v56 }
 0x5fd   :  { %1521 = vst [vmem:[%s3019_s12 + $0x28] sm:$0xff] %v1496_v52  ;;  %v1362_v49 = vpop.f32.mrf.mxu3 }
 0x5fe   :  { %v1363_v25 = vadd.f32 %v2899_v19, %v1362_v49 }
 0x600   :  { %v1743_v41 = vpop.eup %1742  ;;  %v1423_v0 = vmul.f32 0.5, %v1363_v25 }
 0x601   :  { %v1472_v7 = vmul.f32 0.5, %v1743_v41 }
 0x602   :  { %1744 = vtanh.f32 %v1423_v0  ;;  %1412 = vmatmul.f32.gmra.mxu3 %v1303_v30 }
 0x603   :  { %v1497_v4 = vadd.f32 0.5, %v1472_v7 }
 0x605   :  { %1522 = vst [vmem:[%s3019_s12 + $0x30] sm:$0xff] %v1497_v4  ;;  %v1365_v59 = vpop.f32.mrf.mxu3 }
 0x606   :  { %v1366_v10 = vadd.f32 %v2899_v19, %v1365_v59 }
 0x608   :  { %v1745_v43 = vpop.eup %1744  ;;  %v1424_v44 = vmul.f32 0.5, %v1366_v10 }
 0x609   :  { %v1473_v36 = vmul.f32 0.5, %v1745_v43 }
 0x60a   :  { %1746 = vtanh.f32 %v1424_v44 }
 0x60b   :  { %v1498_v51 = vadd.f32 0.5, %v1473_v36 }
 0x60d   :  { %1523 = vst [vmem:[%s3019_s12 + $0x38] sm:$0xff] %v1498_v51  ;;  %v1368_v60 = vpop.f32.mrf.mxu3 }
 0x60e   :  { %v1369_v55 = vadd.f32 %v2899_v19, %v1368_v60 }
 0x610   :  { %v1747_v24 = vpop.eup %1746  ;;  %v1425_v40 = vmul.f32 0.5, %v1369_v55 }
 0x611   :  { %v1474_v48 = vmul.f32 0.5, %v1747_v24 }
 0x612   :  { %1748 = vtanh.f32 %v1425_v40 }
 0x613   :  { %v1499_v12 = vadd.f32 0.5, %v1474_v48 }
 0x615   :  { %1524 = vst [vmem:[%s3019_s12 + $0x40] sm:$0xff] %v1499_v12  ;;  %v1371_v21 = vpop.f32.mrf.mxu3 }
 0x616   :  { %v1372_v62 = vadd.f32 %v2899_v19, %v1371_v21 }
 0x618   :  { %v1749_v63 = vpop.eup %1748  ;;  %v1426_v32 = vmul.f32 0.5, %v1372_v62 }
 0x619   :  { %v1475_v2 = vmul.f32 0.5, %v1749_v63 }
 0x61a   :  { %1750 = vtanh.f32 %v1426_v32 }
 0x61b   :  { %v1500_v18 = vadd.f32 0.5, %v1475_v2 }
 0x61d   :  { %1525 = vst [vmem:[%s3019_s12 + $0x48] sm:$0xff] %v1500_v18  ;;  %v1374_v29 = vpop.f32.mrf.mxu3 }
 0x61e   :  { %v1375_v50 = vadd.f32 %v2899_v19, %v1374_v29 }
 0x620   :  { %v1751_v14 = vpop.eup %1750  ;;  %v1427_v6 = vmul.f32 0.5, %v1375_v50 }
 0x621   :  { %v1476_v27 = vmul.f32 0.5, %v1751_v14 }
 0x622   :  { %1752 = vtanh.f32 %v1427_v6 }
 0x623   :  { %v1501_v26 = vadd.f32 0.5, %v1476_v27 }
 0x625   :  { %1526 = vst [vmem:[%s3019_s12 + $0x50] sm:$0xff] %v1501_v26  ;;  %v1377_v11 = vpop.f32.mrf.mxu3 }
 0x626   :  { %v1378_v9 = vadd.f32 %v2899_v19, %v1377_v11 }
 0x628   :  { %v1753_v5 = vpop.eup %1752  ;;  %v1428_v42 = vmul.f32 0.5, %v1378_v9 }
 0x629   :  { %v1477_v54 = vmul.f32 0.5, %v1753_v5 }
 0x62a   :  { %1754 = vtanh.f32 %v1428_v42 }
 0x62b   :  { %v1502_v46 = vadd.f32 0.5, %v1477_v54 }
 0x62d   :  { %1527 = vst [vmem:[%s3019_s12 + $0x58] sm:$0xff] %v1502_v46  ;;  %v1380_v61 = vpop.f32.mrf.mxu3 }
 0x62e   :  { %v1381_v58 = vadd.f32 %v2899_v19, %v1380_v61 }
 0x630   :  { %v1755_v53 = vpop.eup %1754  ;;  %v1429_v8 = vmul.f32 0.5, %v1381_v58 }
 0x631   :  { %v1478_v47 = vmul.f32 0.5, %v1755_v53 }
 0x632   :  { %1756 = vtanh.f32 %v1429_v8 }
 0x633   :  { %v1503_v45 = vadd.f32 0.5, %v1478_v47 }
 0x635   :  { %1528 = vst [vmem:[%s3019_s12 + $0x60] sm:$0xff] %v1503_v45  ;;  %v1383_v22 = vpop.f32.mrf.mxu3 }
 0x636   :  { %v1384_v33 = vadd.f32 %v2899_v19, %v1383_v22 }
 0x638   :  { %v1757_v37 = vpop.eup %1756  ;;  %v1430_v38 = vmul.f32 0.5, %v1384_v33 }
 0x639   :  { %v1479_v3 = vmul.f32 0.5, %v1757_v37 }
 0x63a   :  { %1758 = vtanh.f32 %v1430_v38 }
 0x63b   :  { %v1504_v15 = vadd.f32 0.5, %v1479_v3 }
 0x63d   :  { %1529 = vst [vmem:[%s3019_s12 + $0x68] sm:$0xff] %v1504_v15  ;;  %v1386_v57 = vpop.f32.mrf.mxu3 }
 0x63e   :  { %v1387_v39 = vadd.f32 %v2899_v19, %v1386_v57 }
 0x640   :  { %v1759_v28 = vpop.eup %1758  ;;  %v1431_v34 = vmul.f32 0.5, %v1387_v39 }
 0x641   :  { %v1480_v16 = vmul.f32 0.5, %v1759_v28 }
 0x642   :  { %1760 = vtanh.f32 %v1431_v34 }
 0x643   :  { %v1505_v23 = vadd.f32 0.5, %v1480_v16 }
 0x645   :  { %1530 = vst [vmem:[%s3019_s12 + $0x70] sm:$0xff] %v1505_v23  ;;  %v1389_v13 = vpop.f32.mrf.mxu3 }
 0x646   :  { %v1390_v35 = vadd.f32 %v2899_v19, %v1389_v13 }
 0x648   :  { %v1761_v17 = vpop.eup %1760  ;;  %v1432_v1 = vmul.f32 0.5, %v1390_v35 }
 0x649   :  { %v1481_v20 = vmul.f32 0.5, %v1761_v17 }
 0x64a   :  { %1762 = vtanh.f32 %v1432_v1 }
 0x64b   :  { %v1506_v31 = vadd.f32 0.5, %v1481_v20 }
 0x64d   :  { %1531 = vst [vmem:[%s3019_s12 + $0x78] sm:$0xff] %v1506_v31  ;;  %v1392_v52 = vpop.f32.mrf.mxu3 }
 0x64e   :  { %v1393_v56 = vadd.f32 %v2899_v19, %v1392_v52 }
 0x650   :  { %v1763_v49 = vpop.eup %1762  ;;  %v1433_v25 = vmul.f32 0.5, %v1393_v56 }
 0x651   :  { %v1482_v41 = vmul.f32 0.5, %v1763_v49 }
 0x652   :  { %1764 = vtanh.f32 %v1433_v25 }
 0x653   :  { %v1507_v0 = vadd.f32 0.5, %v1482_v41 }
 0x655   :  { %1532 = vst [vmem:[%s3019_s12 + $0x80] sm:$0xff] %v1507_v0  ;;  %v1395_v30 = vpop.f32.mrf.mxu3 }
 0x656   :  { %v1396_v7 = vadd.f32 %v2899_v19, %v1395_v30 }
 0x658   :  { %v1765_v4 = vpop.eup %1764  ;;  %v1434_v59 = vmul.f32 0.5, %v1396_v7 }
 0x659   :  { %v1483_v10 = vmul.f32 0.5, %v1765_v4 }
 0x65a   :  { %1766 = vtanh.f32 %v1434_v59 }
 0x65b   :  { %v1508_v43 = vadd.f32 0.5, %v1483_v10 }
 0x65d   :  { %1533 = vst [vmem:[%s3019_s12 + $0x88] sm:$0xff] %v1508_v43  ;;  %v1398_v44 = vpop.f32.mrf.mxu3 }
 0x65e   :  { %v1399_v36 = vadd.f32 %v2899_v19, %v1398_v44 }
 0x660   :  { %v1767_v51 = vpop.eup %1766  ;;  %v1435_v60 = vmul.f32 0.5, %v1399_v36 }
 0x661   :  { %v1484_v55 = vmul.f32 0.5, %v1767_v51 }
 0x662   :  { %1768 = vtanh.f32 %v1435_v60 }
 0x663   :  { %v1509_v24 = vadd.f32 0.5, %v1484_v55 }
 0x665   :  { %1534 = vst [vmem:[%s3019_s12 + $0x90] sm:$0xff] %v1509_v24  ;;  %v1401_v40 = vpop.f32.mrf.mxu3 }
 0x666   :  { %v1402_v48 = vadd.f32 %v2899_v19, %v1401_v40 }
 0x668   :  { %v1769_v12 = vpop.eup %1768  ;;  %v1436_v21 = vmul.f32 0.5, %v1402_v48 }
 0x669   :  { %v1485_v62 = vmul.f32 0.5, %v1769_v12 }
 0x66a   :  { %1770 = vtanh.f32 %v1436_v21 }
 0x66b   :  { %v1510_v63 = vadd.f32 0.5, %v1485_v62 }
 0x66d   :  { %1535 = vst [vmem:[%s3019_s12 + $0x98] sm:$0xff] %v1510_v63  ;;  %v1404_v32 = vpop.f32.mrf.mxu3 }
 0x66e   :  { %v1405_v2 = vadd.f32 %v2899_v19, %v1404_v32 }
 0x670   :  { %v1771_v18 = vpop.eup %1770  ;;  %v1437_v29 = vmul.f32 0.5, %v1405_v2 }
 0x671   :  { %v1486_v50 = vmul.f32 0.5, %v1771_v18 }
 0x672   :  { %1772 = vtanh.f32 %v1437_v29 }
 0x673   :  { %v1511_v14 = vadd.f32 0.5, %v1486_v50 }
 0x675   :  { %1536 = vst [vmem:[%s3019_s12 + $0xa0] sm:$0xff] %v1511_v14  ;;  %v1407_v6 = vpop.f32.mrf.mxu3 }
 0x676   :  { %v1408_v27 = vadd.f32 %v2899_v19, %v1407_v6 }
 0x678   :  { %v1773_v26 = vpop.eup %1772  ;;  %v1438_v11 = vmul.f32 0.5, %v1408_v27 }
 0x679   :  { %v1487_v9 = vmul.f32 0.5, %v1773_v26 }
 0x67a   :  { %1774 = vtanh.f32 %v1438_v11 }
 0x67b   :  { %v1512_v5 = vadd.f32 0.5, %v1487_v9 }
 0x67d   :  { %1537 = vst [vmem:[%s3019_s12 + $0xa8] sm:$0xff] %v1512_v5  ;;  %v1410_v42 = vpop.f32.mrf.mxu3 }
 0x67e   :  { %v1411_v54 = vadd.f32 %v2899_v19, %v1410_v42 }
 0x680   :  { %v1775_v46 = vpop.eup %1774  ;;  %v1439_v61 = vmul.f32 0.5, %v1411_v54 }
 0x681   :  { %v1488_v58 = vmul.f32 0.5, %v1775_v46 }
 0x682   :  { %1776 = vtanh.f32 %v1439_v61 }
 0x683   :  { %v1513_v53 = vadd.f32 0.5, %v1488_v58 }
 0x685   :  { %1538 = vst [vmem:[%s3019_s12 + $0xb0] sm:$0xff] %v1513_v53  ;;  %v1413_v8 = vpop.f32.mrf.mxu3 }
 0x686   :  { %v1414_v47 = vadd.f32 %v2899_v19, %v1413_v8 }
 0x688   :  { %v1777_v45 = vpop.eup %1776  ;;  %v1440_v22 = vmul.f32 0.5, %v1414_v47 }
 0x689   :  { %v1489_v33 = vmul.f32 0.5, %v1777_v45 }
 0x68a   :  { %1778 = vtanh.f32 %v1440_v22 }
 0x68b   :  { %v1514_v37 = vadd.f32 0.5, %v1489_v33 }
 0x68d   :  { %1539 = vst [vmem:[%s3019_s12 + $0xb8] sm:$0xff] %v1514_v37 }
 0x690   :  { %v1779_v38 = vpop.eup %1778 }
 0x691   :  { %v1490_v3 = vmul.f32 0.5, %v1779_v38 }
 0x693   :  { %v1515_v15 = vadd.f32 0.5, %v1490_v3 }
 0x695   :  { %1540 = vst [vmem:[%s3019_s12 + $0xc0] sm:$0xff] %v1515_v15 }

</bundles_post_ra>
